<compile_context>
chip_gen: v7x
topology: tpu7x:2x2x1
jax: 0.10.0
libtpu: 0.0.40
codegen_flags: <defaults>
</compile_context>

<pallas_src>
import functools

import jax
import jax.numpy as jnp
from jax.experimental import pallas as pl
from jax.experimental.pallas import tpu as pltpu


def _round_up(x, m):
    return (x + m - 1) // m * m


def _conv_bn_relu_kernel(x_ref, w_ref, b_ref, o_ref, *, stride, h_out, w_out):
    """One batch element per grid step.

    x_ref: (1, s, s, Hp/s, Wp/s, Cin_p)  phase-split, spatially padded input
    w_ref: (3, 3, Cin_p, Cout_p)         conv weights with BN scale folded in
    b_ref: (1, Cout_p)                   folded BN bias (f32)
    o_ref: (1, H_out, W_out, Cout_p)
    """
    cout_p = o_ref.shape[-1]

    acc = None
    for kh in range(3):
        for kw in range(3):
            p, oh = kh % stride, kh // stride
            q, ow = kw % stride, kw // stride
            # Static, stride-1 window slice straight from the VMEM ref.
            win = x_ref[0, p, q, oh:oh + h_out, ow:ow + w_out, :]
            lhs = win.reshape(h_out * w_out, win.shape[-1])
            tap = jnp.dot(lhs, w_ref[kh, kw],
                          preferred_element_type=jnp.float32)
            acc = tap if acc is None else acc + tap

    # Folded BN bias + ReLU (f32), then lane-dense store.
    y = jnp.maximum(acc + b_ref[...], 0.0)
    o_ref[0] = y.reshape(h_out, w_out, cout_p).astype(o_ref.dtype)


def mobilenet_conv_bn_relu_pallas(x_nchw, w_oihw, gamma, beta, mean, var,
                                  stride, eps=1e-5,
                                  compute_dtype=jnp.float32):
    """PyTorch-style NCHW in/out; Conv2d(3x3, stride, pad=1, bias=False)
    + BatchNorm2d(eval) + ReLU, computed in NHWC inside the kernel."""
    n, cin, h, w = x_nchw.shape
    cout = w_oihw.shape[0]
    s = int(stride)
    h_out = (h + 2 - 3) // s + 1
    w_out = (w + 2 - 3) // s + 1

    # Lane-dense channel padding (multiples of 128).
    cin_p = _round_up(cin, 128)
    cout_p = _round_up(cout, 128)

    # Fold BatchNorm (inference) into the conv:  y = conv(x) * scale + bias.
    scale = gamma / jnp.sqrt(var + eps)
    bias = beta - mean * scale
    w_hwio = jnp.transpose(w_oihw, (2, 3, 1, 0)) * scale[None, None, None, :]
    w_hwio = jnp.pad(w_hwio, ((0, 0), (0, 0),
                              (0, cin_p - cin), (0, cout_p - cout)))
    w_hwio = w_hwio.astype(compute_dtype)
    bias_p = jnp.pad(bias, (0, cout_p - cout)).reshape(1, cout_p)
    bias_p = bias_p.astype(jnp.float32)

    # NCHW -> NHWC, conv padding=1, round H/W up to a multiple of the stride,
    # then split into stride phases so the kernel only takes stride-1 slices.
    # TODO(synk): keep NHWC end-to-end in a full network to avoid these
    # boundary transposes / pads going through HBM.
    hp = _round_up(h + 2, s)
    wp = _round_up(w + 2, s)
    x_nhwc = jnp.transpose(x_nchw, (0, 2, 3, 1))
    x_pad = jnp.pad(x_nhwc, ((0, 0), (1, hp - h - 1), (1, wp - w - 1),
                             (0, cin_p - cin)))
    x_ph = x_pad.reshape(n, hp // s, s, wp // s, s, cin_p)
    x_ph = jnp.transpose(x_ph, (0, 2, 4, 1, 3, 5)).astype(compute_dtype)
    hps, wps = hp // s, wp // s

    kernel = functools.partial(_conv_bn_relu_kernel, stride=s,
                               h_out=h_out, w_out=w_out)

    out_nhwc = pl.pallas_call(
        kernel,
        out_shape=jax.ShapeDtypeStruct((n, h_out, w_out, cout_p),
                                       x_nchw.dtype),
        grid=(n,),
        in_specs=[
            pl.BlockSpec((1, s, s, hps, wps, cin_p),
                         lambda i: (i, 0, 0, 0, 0, 0)),
            pl.BlockSpec((3, 3, cin_p, cout_p), lambda i: (0, 0, 0, 0)),
            pl.BlockSpec((1, cout_p), lambda i: (0, 0)),
        ],
        out_specs=pl.BlockSpec((1, h_out, w_out, cout_p),
                               lambda i: (i, 0, 0, 0)),
        compiler_params=pltpu.CompilerParams(
            dimension_semantics=("parallel",)),
    )(x_ph, w_hwio, bias_p)

    # TODO(synk): for high-resolution layers on v7x (64 MiB VMEM) add a
    # row-strip grid axis with a 2-row input halo; whole-image blocks per batch
    # element are fine at MobileNet sizes on v5e/v6e.
    return jnp.transpose(out_nhwc[..., :cout], (0, 3, 1, 2))


def _reference(x_nchw, w_oihw, gamma, beta, mean, var, stride, eps=1e-5):
    y = jax.lax.conv_general_dilated(
        x_nchw, w_oihw, window_strides=(stride, stride),
        padding=((1, 1), (1, 1)),
        dimension_numbers=("NCHW", "OIHW", "NCHW"),
        precision=jax.lax.Precision.HIGHEST)
    inv = gamma / jnp.sqrt(var + eps)
    y = (y - mean[None, :, None, None]) * inv[None, :, None, None] \
        + beta[None, :, None, None]
    return jnp.maximum(y, 0.0)


if __name__ == "__main__":
    batch, in_channels, out_channels, H, W = 2, 4, 8, 16, 16
    eps = 1e-5

    key = jax.random.PRNGKey(0)
    keys = jax.random.split(key, 6)

    x = jax.random.normal(keys[0], (batch, in_channels, H, W), jnp.float32)
    wgt = jax.random.normal(keys[1], (out_channels, in_channels, 3, 3),
                            jnp.float32) * 0.2
    gamma = jax.random.uniform(keys[2], (out_channels,), jnp.float32, 0.5, 1.5)
    beta = jax.random.normal(keys[3], (out_channels,), jnp.float32) * 0.1
    mean = jax.random.normal(keys[4], (out_channels,), jnp.float32) * 0.1
    var = jax.random.uniform(keys[5], (out_channels,), jnp.float32, 0.5, 1.5)

    configs = [
        # (stride, MXU compute dtype, rtol, atol)
        (1, jnp.float32, 5e-4, 5e-4),     # stride-1, f32 path
        (2, jnp.float32, 5e-4, 5e-4),     # stride-2 via phase split
        (1, jnp.bfloat16, 5e-2, 5e-2),    # bf16 MXU operands, f32 accumulate
    ]
    for stride, cdtype, rtol, atol in configs:
        out = mobilenet_conv_bn_relu_pallas(x, wgt, gamma, beta, mean, var,
                                            stride, eps=eps,
                                            compute_dtype=cdtype)
        out = jax.block_until_ready(out)
        ref = jax.block_until_ready(
            _reference(x, wgt, gamma, beta, mean, var, stride, eps=eps))
        assert out.shape == ref.shape, (stride, out.shape, ref.shape)
        max_err = float(jnp.max(jnp.abs(out - ref)))
        assert jnp.allclose(out, ref, rtol=rtol, atol=atol), (
            "mismatch", stride, str(cdtype), max_err)

    print("KERNEL_OK")
</pallas_src>

<mosaic_0001>
module attributes {stable_mosaic.version = 11 : i64} {
  func.func @_conv_bn_relu_kernel(%arg0: i32, %arg1: memref<1x1x1x18x18x128xf32, #tpu.memory_space<vmem>>, %arg2: memref<3x3x128x128xf32, #tpu.memory_space<vmem>>, %arg3: memref<1x128xf32, #tpu.memory_space<vmem>>, %arg4: memref<1x16x16x128xf32, #tpu.memory_space<vmem>>) attributes {dimension_semantics = [#tpu.dimension_semantics<parallel>], iteration_bounds = array<i64: 2>, scalar_prefetch = 0 : i64, scratch_operands = 0 : i64, tpu.core_type = #tpu.core_type<tc>, window_params = [{transform_indices = @transform_0, window_bounds = array<i64: 1, 1, 1, 18, 18, 128>}, {pipeline_mode = #tpu.pipeline_mode<synchronous>, transform_indices = @transform_1, window_bounds = array<i64: 3, 3, 128, 128>}, {pipeline_mode = #tpu.pipeline_mode<synchronous>, transform_indices = @transform_2, window_bounds = array<i64: 1, 128>}, {transform_indices = @transform_3, window_bounds = array<i64: 1, 16, 16, 128>}]} {
    %c0 = arith.constant 0 : index
    %c0_0 = arith.constant 0 : index
    %c0_1 = arith.constant 0 : index
    %c0_2 = arith.constant 0 : index
    %c0_3 = arith.constant 0 : index
    %c0_4 = arith.constant 0 : index
    %0 = vector.load %arg1[%c0, %c0_0, %c0_1, %c0_2, %c0_3, %c0_4] : memref<1x1x1x18x18x128xf32, #tpu.memory_space<vmem>>, vector<1x1x1x16x16x128xf32>
    %1 = vector.shape_cast %0 : vector<1x1x1x16x16x128xf32> to vector<16x16x128xf32>
    %2 = vector.shape_cast %1 : vector<16x16x128xf32> to vector<256x128xf32>
    %c0_5 = arith.constant 0 : index
    %c0_6 = arith.constant 0 : index
    %c0_7 = arith.constant 0 : index
    %c0_8 = arith.constant 0 : index
    %3 = vector.load %arg2[%c0_5, %c0_6, %c0_7, %c0_8] : memref<3x3x128x128xf32, #tpu.memory_space<vmem>>, vector<1x1x128x128xf32>
    %4 = vector.shape_cast %3 : vector<1x1x128x128xf32> to vector<128x128xf32>
    %cst = arith.constant dense<0.000000e+00> : vector<256x128xf32>
    %5 = tpu.matmul %2, %4, %cst {dimension_numbers = #tpu.dot_dimension_numbers<[1], [0], [0], [1], [0, 0, 1, 1], [], []>} : vector<256x128xf32>, vector<128x128xf32>, vector<256x128xf32> -> vector<256x128xf32>
    %c0_9 = arith.constant 0 : index
    %c0_10 = arith.constant 0 : index
    %c0_11 = arith.constant 0 : index
    %c0_12 = arith.constant 0 : index
    %c1 = arith.constant 1 : index
    %c0_13 = arith.constant 0 : index
    %6 = vector.load %arg1[%c0_9, %c0_10, %c0_11, %c0_12, %c1, %c0_13] : memref<1x1x1x18x18x128xf32, #tpu.memory_space<vmem>>, vector<1x1x1x16x16x128xf32>
    %7 = vector.shape_cast %6 : vector<1x1x1x16x16x128xf32> to vector<16x16x128xf32>
    %8 = vector.shape_cast %7 : vector<16x16x128xf32> to vector<256x128xf32>
    %c0_14 = arith.constant 0 : index
    %c1_15 = arith.constant 1 : index
    %c0_16 = arith.constant 0 : index
    %c0_17 = arith.constant 0 : index
    %9 = vector.load %arg2[%c0_14, %c1_15, %c0_16, %c0_17] : memref<3x3x128x128xf32, #tpu.memory_space<vmem>>, vector<1x1x128x128xf32>
    %10 = vector.shape_cast %9 : vector<1x1x128x128xf32> to vector<128x128xf32>
    %cst_18 = arith.constant dense<0.000000e+00> : vector<256x128xf32>
    %11 = tpu.matmul %8, %10, %cst_18 {dimension_numbers = #tpu.dot_dimension_numbers<[1], [0], [0], [1], [0, 0, 1, 1], [], []>} : vector<256x128xf32>, vector<128x128xf32>, vector<256x128xf32> -> vector<256x128xf32>
    %12 = arith.addf %5, %11 : vector<256x128xf32>
    %c0_19 = arith.constant 0 : index
    %c0_20 = arith.constant 0 : index
    %c0_21 = arith.constant 0 : index
    %c0_22 = arith.constant 0 : index
    %c2 = arith.constant 2 : index
    %c0_23 = arith.constant 0 : index
    %13 = vector.load %arg1[%c0_19, %c0_20, %c0_21, %c0_22, %c2, %c0_23] : memref<1x1x1x18x18x128xf32, #tpu.memory_space<vmem>>, vector<1x1x1x16x16x128xf32>
    %14 = vector.shape_cast %13 : vector<1x1x1x16x16x128xf32> to vector<16x16x128xf32>
    %15 = vector.shape_cast %14 : vector<16x16x128xf32> to vector<256x128xf32>
    %c0_24 = arith.constant 0 : index
    %c2_25 = arith.constant 2 : index
    %c0_26 = arith.constant 0 : index
    %c0_27 = arith.constant 0 : index
    %16 = vector.load %arg2[%c0_24, %c2_25, %c0_26, %c0_27] : memref<3x3x128x128xf32, #tpu.memory_space<vmem>>, vector<1x1x128x128xf32>
    %17 = vector.shape_cast %16 : vector<1x1x128x128xf32> to vector<128x128xf32>
    %cst_28 = arith.constant dense<0.000000e+00> : vector<256x128xf32>
    %18 = tpu.matmul %15, %17, %cst_28 {dimension_numbers = #tpu.dot_dimension_numbers<[1], [0], [0], [1], [0, 0, 1, 1], [], []>} : vector<256x128xf32>, vector<128x128xf32>, vector<256x128xf32> -> vector<256x128xf32>
    %19 = arith.addf %12, %18 : vector<256x128xf32>
    %c0_29 = arith.constant 0 : index
    %c0_30 = arith.constant 0 : index
    %c0_31 = arith.constant 0 : index
    %c1_32 = arith.constant 1 : index
    %c0_33 = arith.constant 0 : index
    %c0_34 = arith.constant 0 : index
    %20 = vector.load %arg1[%c0_29, %c0_30, %c0_31, %c1_32, %c0_33, %c0_34] : memref<1x1x1x18x18x128xf32, #tpu.memory_space<vmem>>, vector<1x1x1x16x16x128xf32>
    %21 = vector.shape_cast %20 : vector<1x1x1x16x16x128xf32> to vector<16x16x128xf32>
    %22 = vector.shape_cast %21 : vector<16x16x128xf32> to vector<256x128xf32>
    %c1_35 = arith.constant 1 : index
    %c0_36 = arith.constant 0 : index
    %c0_37 = arith.constant 0 : index
    %c0_38 = arith.constant 0 : index
    %23 = vector.load %arg2[%c1_35, %c0_36, %c0_37, %c0_38] : memref<3x3x128x128xf32, #tpu.memory_space<vmem>>, vector<1x1x128x128xf32>
    %24 = vector.shape_cast %23 : vector<1x1x128x128xf32> to vector<128x128xf32>
    %cst_39 = arith.constant dense<0.000000e+00> : vector<256x128xf32>
    %25 = tpu.matmul %22, %24, %cst_39 {dimension_numbers = #tpu.dot_dimension_numbers<[1], [0], [0], [1], [0, 0, 1, 1], [], []>} : vector<256x128xf32>, vector<128x128xf32>, vector<256x128xf32> -> vector<256x128xf32>
    %26 = arith.addf %19, %25 : vector<256x128xf32>
    %c0_40 = arith.constant 0 : index
    %c0_41 = arith.constant 0 : index
    %c0_42 = arith.constant 0 : index
    %c1_43 = arith.constant 1 : index
    %c1_44 = arith.constant 1 : index
    %c0_45 = arith.constant 0 : index
    %27 = vector.load %arg1[%c0_40, %c0_41, %c0_42, %c1_43, %c1_44, %c0_45] : memref<1x1x1x18x18x128xf32, #tpu.memory_space<vmem>>, vector<1x1x1x16x16x128xf32>
    %28 = vector.shape_cast %27 : vector<1x1x1x16x16x128xf32> to vector<16x16x128xf32>
    %29 = vector.shape_cast %28 : vector<16x16x128xf32> to vector<256x128xf32>
    %c1_46 = arith.constant 1 : index
    %c1_47 = arith.constant 1 : index
    %c0_48 = arith.constant 0 : index
    %c0_49 = arith.constant 0 : index
    %30 = vector.load %arg2[%c1_46, %c1_47, %c0_48, %c0_49] : memref<3x3x128x128xf32, #tpu.memory_space<vmem>>, vector<1x1x128x128xf32>
    %31 = vector.shape_cast %30 : vector<1x1x128x128xf32> to vector<128x128xf32>
    %cst_50 = arith.constant dense<0.000000e+00> : vector<256x128xf32>
    %32 = tpu.matmul %29, %31, %cst_50 {dimension_numbers = #tpu.dot_dimension_numbers<[1], [0], [0], [1], [0, 0, 1, 1], [], []>} : vector<256x128xf32>, vector<128x128xf32>, vector<256x128xf32> -> vector<256x128xf32>
    %33 = arith.addf %26, %32 : vector<256x128xf32>
    %c0_51 = arith.constant 0 : index
    %c0_52 = arith.constant 0 : index
    %c0_53 = arith.constant 0 : index
    %c1_54 = arith.constant 1 : index
    %c2_55 = arith.constant 2 : index
    %c0_56 = arith.constant 0 : index
    %34 = vector.load %arg1[%c0_51, %c0_52, %c0_53, %c1_54, %c2_55, %c0_56] : memref<1x1x1x18x18x128xf32, #tpu.memory_space<vmem>>, vector<1x1x1x16x16x128xf32>
    %35 = vector.shape_cast %34 : vector<1x1x1x16x16x128xf32> to vector<16x16x128xf32>
    %36 = vector.shape_cast %35 : vector<16x16x128xf32> to vector<256x128xf32>
    %c1_57 = arith.constant 1 : index
    %c2_58 = arith.constant 2 : index
    %c0_59 = arith.constant 0 : index
    %c0_60 = arith.constant 0 : index
    %37 = vector.load %arg2[%c1_57, %c2_58, %c0_59, %c0_60] : memref<3x3x128x128xf32, #tpu.memory_space<vmem>>, vector<1x1x128x128xf32>
    %38 = vector.shape_cast %37 : vector<1x1x128x128xf32> to vector<128x128xf32>
    %cst_61 = arith.constant dense<0.000000e+00> : vector<256x128xf32>
    %39 = tpu.matmul %36, %38, %cst_61 {dimension_numbers = #tpu.dot_dimension_numbers<[1], [0], [0], [1], [0, 0, 1, 1], [], []>} : vector<256x128xf32>, vector<128x128xf32>, vector<256x128xf32> -> vector<256x128xf32>
    %40 = arith.addf %33, %39 : vector<256x128xf32>
    %c0_62 = arith.constant 0 : index
    %c0_63 = arith.constant 0 : index
    %c0_64 = arith.constant 0 : index
    %c2_65 = arith.constant 2 : index
    %c0_66 = arith.constant 0 : index
    %c0_67 = arith.constant 0 : index
    %41 = vector.load %arg1[%c0_62, %c0_63, %c0_64, %c2_65, %c0_66, %c0_67] : memref<1x1x1x18x18x128xf32, #tpu.memory_space<vmem>>, vector<1x1x1x16x16x128xf32>
    %42 = vector.shape_cast %41 : vector<1x1x1x16x16x128xf32> to vector<16x16x128xf32>
    %43 = vector.shape_cast %42 : vector<16x16x128xf32> to vector<256x128xf32>
    %c2_68 = arith.constant 2 : index
    %c0_69 = arith.constant 0 : index
    %c0_70 = arith.constant 0 : index
    %c0_71 = arith.constant 0 : index
    %44 = vector.load %arg2[%c2_68, %c0_69, %c0_70, %c0_71] : memref<3x3x128x128xf32, #tpu.memory_space<vmem>>, vector<1x1x128x128xf32>
    %45 = vector.shape_cast %44 : vector<1x1x128x128xf32> to vector<128x128xf32>
    %cst_72 = arith.constant dense<0.000000e+00> : vector<256x128xf32>
    %46 = tpu.matmul %43, %45, %cst_72 {dimension_numbers = #tpu.dot_dimension_numbers<[1], [0], [0], [1], [0, 0, 1, 1], [], []>} : vector<256x128xf32>, vector<128x128xf32>, vector<256x128xf32> -> vector<256x128xf32>
    %47 = arith.addf %40, %46 : vector<256x128xf32>
    %c0_73 = arith.constant 0 : index
    %c0_74 = arith.constant 0 : index
    %c0_75 = arith.constant 0 : index
    %c2_76 = arith.constant 2 : index
    %c1_77 = arith.constant 1 : index
    %c0_78 = arith.constant 0 : index
    %48 = vector.load %arg1[%c0_73, %c0_74, %c0_75, %c2_76, %c1_77, %c0_78] : memref<1x1x1x18x18x128xf32, #tpu.memory_space<vmem>>, vector<1x1x1x16x16x128xf32>
    %49 = vector.shape_cast %48 : vector<1x1x1x16x16x128xf32> to vector<16x16x128xf32>
    %50 = vector.shape_cast %49 : vector<16x16x128xf32> to vector<256x128xf32>
    %c2_79 = arith.constant 2 : index
    %c1_80 = arith.constant 1 : index
    %c0_81 = arith.constant 0 : index
    %c0_82 = arith.constant 0 : index
    %51 = vector.load %arg2[%c2_79, %c1_80, %c0_81, %c0_82] : memref<3x3x128x128xf32, #tpu.memory_space<vmem>>, vector<1x1x128x128xf32>
    %52 = vector.shape_cast %51 : vector<1x1x128x128xf32> to vector<128x128xf32>
    %cst_83 = arith.constant dense<0.000000e+00> : vector<256x128xf32>
    %53 = tpu.matmul %50, %52, %cst_83 {dimension_numbers = #tpu.dot_dimension_numbers<[1], [0], [0], [1], [0, 0, 1, 1], [], []>} : vector<256x128xf32>, vector<128x128xf32>, vector<256x128xf32> -> vector<256x128xf32>
    %54 = arith.addf %47, %53 : vector<256x128xf32>
    %c0_84 = arith.constant 0 : index
    %c0_85 = arith.constant 0 : index
    %c0_86 = arith.constant 0 : index
    %c2_87 = arith.constant 2 : index
    %c2_88 = arith.constant 2 : index
    %c0_89 = arith.constant 0 : index
    %55 = vector.load %arg1[%c0_84, %c0_85, %c0_86, %c2_87, %c2_88, %c0_89] : memref<1x1x1x18x18x128xf32, #tpu.memory_space<vmem>>, vector<1x1x1x16x16x128xf32>
    %56 = vector.shape_cast %55 : vector<1x1x1x16x16x128xf32> to vector<16x16x128xf32>
    %57 = vector.shape_cast %56 : vector<16x16x128xf32> to vector<256x128xf32>
    %c2_90 = arith.constant 2 : index
    %c2_91 = arith.constant 2 : index
    %c0_92 = arith.constant 0 : index
    %c0_93 = arith.constant 0 : index
    %58 = vector.load %arg2[%c2_90, %c2_91, %c0_92, %c0_93] : memref<3x3x128x128xf32, #tpu.memory_space<vmem>>, vector<1x1x128x128xf32>
    %59 = vector.shape_cast %58 : vector<1x1x128x128xf32> to vector<128x128xf32>
    %cst_94 = arith.constant dense<0.000000e+00> : vector<256x128xf32>
    %60 = tpu.matmul %57, %59, %cst_94 {dimension_numbers = #tpu.dot_dimension_numbers<[1], [0], [0], [1], [0, 0, 1, 1], [], []>} : vector<256x128xf32>, vector<128x128xf32>, vector<256x128xf32> -> vector<256x128xf32>
    %61 = arith.addf %54, %60 : vector<256x128xf32>
    %c0_95 = arith.constant 0 : index
    %c0_96 = arith.constant 0 : index
    %62 = vector.load %arg3[%c0_95, %c0_96] : memref<1x128xf32, #tpu.memory_space<vmem>>, vector<1x128xf32>
    %63 = vector.broadcast %62 : vector<1x128xf32> to vector<256x128xf32>
    %64 = arith.addf %61, %63 : vector<256x128xf32>
    %cst_97 = arith.constant 0.000000e+00 : f32
    %65 = vector.broadcast %cst_97 : f32 to vector<256x128xf32>
    %66 = arith.maximumf %64, %65 : vector<256x128xf32>
    %67 = vector.shape_cast %66 : vector<256x128xf32> to vector<16x16x128xf32>
    %c0_98 = arith.constant 0 : index
    %c0_99 = arith.constant 0 : index
    %c0_100 = arith.constant 0 : index
    %c0_101 = arith.constant 0 : index
    %68 = vector.load %arg4[%c0_98, %c0_99, %c0_100, %c0_101] : memref<1x16x16x128xf32, #tpu.memory_space<vmem>>, vector<1x16x16x128xf32>
    %69 = vector.shape_cast %68 : vector<1x16x16x128xf32> to vector<16x16x128xf32>
    %70 = vector.shape_cast %67 : vector<16x16x128xf32> to vector<1x16x16x128xf32>
    tpu.vector_store %arg4[%c0_98, %c0_99, %c0_100, %c0_101], %70 {strides = array<i32>} : memref<1x16x16x128xf32, #tpu.memory_space<vmem>>, vector<1x16x16x128xf32>,
    return
  }
  func.func @transform_0(%arg0: i32) -> (i32, i32, i32, i32, i32, i32) {
    %c0_i32 = arith.constant 0 : i32
    %c0_i32_0 = arith.constant 0 : i32
    %c0_i32_1 = arith.constant 0 : i32
    %c0_i32_2 = arith.constant 0 : i32
    %c0_i32_3 = arith.constant 0 : i32
    %c0_i32_4 = arith.constant 0 : i32
    return %arg0, %c0_i32, %c0_i32_0, %c0_i32_1, %c0_i32_2, %c0_i32_3 : i32, i32, i32, i32, i32, i32
  }
  func.func @transform_1(%arg0: i32) -> (i32, i32, i32, i32) {
    %c0_i32 = arith.constant 0 : i32
    %c0_i32_0 = arith.constant 0 : i32
    %c0_i32_1 = arith.constant 0 : i32
    %c0_i32_2 = arith.constant 0 : i32
    %c0_i32_3 = arith.constant 0 : i32
    return %c0_i32, %c0_i32_0, %c0_i32_1, %c0_i32_2 : i32, i32, i32, i32
  }
  func.func @transform_2(%arg0: i32) -> (i32, i32) {
    %c0_i32 = arith.constant 0 : i32
    %c0_i32_0 = arith.constant 0 : i32
    %c0_i32_1 = arith.constant 0 : i32
    return %c0_i32, %c0_i32_0 : i32, i32
  }
  func.func @transform_3(%arg0: i32) -> (i32, i32, i32, i32) {
    %c0_i32 = arith.constant 0 : i32
    %c0_i32_0 = arith.constant 0 : i32
    %c0_i32_1 = arith.constant 0 : i32
    %c0_i32_2 = arith.constant 0 : i32
    return %arg0, %c0_i32, %c0_i32_0, %c0_i32_1 : i32, i32, i32, i32
  }
}

</mosaic_0001>

<bundles_post_ra>
// kernel: tpu_custom_call.1
= control target key start
LH: loop header
LB: loop body
LE: loop exit
PB: predicated region body
PF: predicated region fallthrough
CT: control target
= control target key end

     0   :  { %8 = vsyncpa [#allocation3], 0  ;;  %s6424_s0 = inlined_call_operand.vmem [shape: f32[2,1,1,18,18,128], index: 0, kind: input, shape index: {}]   ;;  %s6425_s1 = inlined_call_operand.vmem [shape: f32[3,3,128,128], index: 1, kind: input, shape index: {}]   ;;  %s6426_s2 = inlined_call_operand.vmem [shape: f32[1,128], index: 2, kind: input, shape index: {}]   ;;  %s6427_s3 = inlined_call_operand.hbm [shape: f32[2,16,16,128], index: 3, kind: output, shape index: {}]  }
   0x1   :  { %10 = vsyncpa [#allocation3 + $0x1], 0  ;;  %s5213_s12 = smov 0   ;;  %s5215_s13 = smov 0  }
   0x2   :  { %s5217_s14 = smov 0   ;;  %s5219_s15 = smov 0  }
   0x3 LB: > { %s5234_s16 = sadd.s32 4294967295, %s5188_s15   ;;  %s3039_s17 = sadd.s32 4294967294, %s5188_s15   ;;  %s5188_s15 = sphi %s5219_s15, %s6533_s15   ;;  %s5184_s14 = sphi %s5217_s14, %s6532_s14   ;;  %s5180_s13 = sphi %s5215_s13, %s6531_s13   ;;  %s5176_s12 = sphi %s5213_s12, %s6530_s12  }
   0x4   : > { %s5238_s18 = sadd.s32 1, %s5188_s15   ;;  %s91_s19 = sadd.s32 1, %s5184_s14 }
   0x5   : > { %s88_s20 = ssub.s32 %s5188_s15, %s5238_s18  ;;  %p101_p0 = scmp.ne.s32.totalorder %s5184_s14, %s5180_s13 }
   0x6   : > { %p89_p1 = scmp.eq.s32.totalorder %s88_s20, 0  ;;  %p102_p2 = scmp.eq.s32.totalorder %s5234_s16, 1 }
   0x7   : > { %p107_p3 = scmp.ne.s32.totalorder %s5180_s13, %s5176_s12  ;;  %p108_p4 = scmp.eq.s32.totalorder %s3039_s17, 1 }
   0x8   : > { %s5249_s21 = scalar_select %p89_p1, %s5184_s14, %s91_s19  }
   0x9   : > { %p5251_p5 = por %p102_p2, %p101_p0  ;;  %p5255_p6 = por %p108_p4, %p107_p3 }
   0xa   : > { %p3042_p7 = scmp.ge.s32.totalorder %s5188_s15, 1  ;;  %p140_p8 = scmp.lt.s32.totalorder %s5188_s15, 3 }
   0xc   : > { %p141_p9 = pnand %p3042_p7, %p140_p8 }
   0xe   : > { %144 = sbr.rel (%p141_p9) target bundleno = 575 (0x23f), region = 32 }
  0x15   : > { %v3045_v0 = vld [vmem:[%s6425_s1 + $0x80] sm:$0xff]  ;;  %v3046_v1 = vld [vmem:[%s6425_s1 + $0x88] sm:$0xff]  ;;  %p164_p10 = scmp.lt.s32.totalorder %s5234_s16, 1  ;;  %v3047_v5 = vld [vmem:[%s6425_s1 + $0x90] sm:$0xff]  ;;  %s3371_s30 = sshll.u32 %s5234_s16, 12 }
  0x16   : > { %v3157_v2 = vld [vmem:[%s6425_s1 + $0x200] sm:$0xff]  ;;  %v4524_v3 = vpack.c.bf16 %v3046_v1, %v3045_v0  ;;  %v3158_v4 = vld [vmem:[%s6425_s1 + $0x208] sm:$0xff]  ;;  %v3048_v6 = vld [vmem:[%s6425_s1 + $0x98] sm:$0xff]  ;;  %s6375_s7 = scalar_lea.hbm %s6427_s3, %s3371_s30  ;;  %s5190_s9 = smov [#allocation2]  }
  0x17   : > { %v5280_v7 = vpack.c.bf16 %v3158_v4, %v3157_v2  ;;  %v4528_v8 = vpack.c.bf16 %v3048_v6, %v3047_v5  ;;  %v3159_v9 = vld [vmem:[%s6425_s1 + $0x210] sm:$0xff]  ;;  %v3160_v10 = vld [vmem:[%s6425_s1 + $0x218] sm:$0xff]  ;;  %v3049_v11 = vld [vmem:[%s6425_s1 + $0xa0] sm:$0xff]  ;;  %s165_s24 = scalar_select %p164_p10, %s5234_s16, 1 }
  0x18   : > { %4525 = vmatprep.subr.bf16.mxu1 %v4524_v3  ;;  %v5292_v12 = vpack.c.bf16 %v3160_v10, %v3159_v9  ;;  %v3050_v13 = vld [vmem:[%s6425_s1 + $0xa8] sm:$0xff]  ;;  %v3161_v14 = vld [vmem:[%s6425_s1 + $0x220] sm:$0xff]  ;;  %v3051_v18 = vld [vmem:[%s6425_s1 + $0xb0] sm:$0xff]  ;;  %s5130_s10 = sshll.u32 %s5190_s9, 4  ;;  %s5131_s10 = int_to_ptr.vmem [resolvable:$false] %s5130_s10 }
  0x19   : > { %v3162_v15 = vld [vmem:[%s6425_s1 + $0x228] sm:$0xff]  ;;  %4653 = vmatprep.subr.bf16.mxu0 %v5280_v7  ;;  %4527 = vmatpush3.bf16.msra.mxu1 %v4524_v3  ;;  %s5084_s4 = smul.u32 432, %s165_s24  ;;  %v4532_v16 = vpack.c.bf16 %v3050_v13, %v3049_v11  ;;  %v3052_v19 = vld [vmem:[%s6425_s1 + $0xb8] sm:$0xff]  ;;  %v3163_v20 = vld [vmem:[%s6425_s1 + $0x230] sm:$0xff]  ;;  %s5132_s11 = scalar_lea.vmem %s5131_s10, 8192 }
  0x1a   : > { %6468 = vst [vmem:[#allocation5_spill] sm:$0xff] %v5292_v12  ;;  %4655 = vmatpush3.bf16.msra.mxu0 %v5280_v7  ;;  %4529 = vmatprep.subr.bf16.mxu1 %v4528_v8  ;;  %v5306_v17 = vpack.c.bf16 %v3162_v15, %v3161_v14  ;;  %v3164_v21 = vld [vmem:[%s6425_s1 + $0x238] sm:$0xff]  ;;  %v4536_v22 = vpack.c.bf16 %v3052_v19, %v3051_v18  ;;  %v3053_v24 = vld [vmem:[%s6425_s1 + $0xc0] sm:$0xff]  ;;  %v3054_v25 = vld [vmem:[%s6425_s1 + $0xc8] sm:$0xff] }
  0x1b   : > { %4657 = vmatprep.subr.bf16.mxu0 %v5292_v12  ;;  %s5323_s24 = scalar_lea.vmem %s6424_s0, %s5084_s4  ;;  %v5327_v23 = vpack.c.bf16 %v3164_v21, %v3163_v20  ;;  %v3165_v27 = vld [vmem:[%s6425_s1 + $0x240] sm:$0xff]  ;;  %v3166_v28 = vld [vmem:[%s6425_s1 + $0x248] sm:$0xff]  ;;  %v4540_v30 = vpack.c.bf16 %v3054_v25, %v3053_v24  ;;  %v3055_v32 = vld [vmem:[%s6425_s1 + $0xd0] sm:$0xff] }
  0x1c   : > { %6469 = vst [vmem:[#allocation6_spill] sm:$0xff] %v5306_v17  ;;  %v217_v26 = vld [vmem:[%s5323_s24 + $0x1] sm:$0xff]  ;;  %v5343_v29 = vld [vmem:[%s5323_s24 + $0x19] sm:$0xff]  ;;  %v5348_v31 = vpack.c.bf16 %v3166_v28, %v3165_v27  ;;  %v3167_v34 = vld [vmem:[%s6425_s1 + $0x250] sm:$0xff] }
  0x1d   : > { %4531 = vmatpush3.bf16.msra.mxu1 %v4528_v8  ;;  %6470 = vst [vmem:[#allocation7_spill] sm:$0xff] %v5327_v23  ;;  %3836 = vmatprep.mubr.f32.mxu1 %v217_v26  ;;  %v3056_v33 = vld [vmem:[%s6425_s1 + $0xd8] sm:$0xff]  ;;  %v3057_v38 = vld [vmem:[%s6425_s1 + $0xe0] sm:$0xff]  ;;  %v3058_v39 = vld [vmem:[%s6425_s1 + $0xe8] sm:$0xff] }
  0x1e   : > { %4659 = vmatpush3.bf16.msra.mxu0 %v5292_v12  ;;  %4533 = vmatprep.subr.bf16.mxu1 %v4532_v16  ;;  %6471 = vst [vmem:[#allocation8_spill] sm:$0xff] %v5348_v31  ;;  %v3168_v35 = vld [vmem:[%s6425_s1 + $0x258] sm:$0xff]  ;;  %v4544_v36 = vpack.c.bf16 %v3056_v33, %v3055_v32  ;;  %v3169_v40 = vld [vmem:[%s6425_s1 + $0x260] sm:$0xff]  ;;  %v3170_v41 = vld [vmem:[%s6425_s1 + $0x268] sm:$0xff]  ;;  %v4548_v42 = vpack.c.bf16 %v3058_v39, %v3057_v38 }
  0x1f   : > { %4661 = vmatprep.subr.bf16.mxu0 %v5306_v17  ;;  %4156 = vmatprep.mubr.f32.mxu0 %v5343_v29  ;;  %v5364_v37 = vpack.c.bf16 %v3168_v35, %v3167_v34  ;;  %v5380_v43 = vpack.c.bf16 %v3170_v41, %v3169_v40  ;;  %v3059_v44 = vld [vmem:[%s6425_s1 + $0xf0] sm:$0xff]  ;;  %v3060_v45 = vld [vmem:[%s6425_s1 + $0xf8] sm:$0xff]  ;;  %v201_v50 = vld [vmem:[%s6425_s1] sm:$0xff] }
  0x20   : > { %v3171_v46 = vld [vmem:[%s6425_s1 + $0x270] sm:$0xff]  ;;  %v3172_v47 = vld [vmem:[%s6425_s1 + $0x278] sm:$0xff]  ;;  %v4552_v48 = vpack.c.bf16 %v3060_v45, %v3059_v44  ;;  %v202_v51 = vld [vmem:[%s6425_s1 + $0x8] sm:$0xff] }
  0x21   : > { %4535 = vmatpush3.bf16.msra.mxu1 %v4532_v16  ;;  %6472 = vst [vmem:[#allocation9_spill] sm:$0xff] %v5364_v37  ;;  %6473 = vst [vmem:[#allocation10_spill] sm:$0xff] %v5380_v43  ;;  %v5396_v49 = vpack.c.bf16 %v3172_v47, %v3171_v46  ;;  %v3205_v52 = vld [vmem:[%s6425_s1 + $0x280] sm:$0xff]  ;;  %v3206_v53 = vld [vmem:[%s6425_s1 + $0x288] sm:$0xff]  ;;  %v4556_v54 = vpack.c.bf16 %v202_v51, %v201_v50 }
  0x22   : > { %4663 = vmatpush3.bf16.msra.mxu0 %v5306_v17  ;;  %4537 = vmatprep.subr.bf16.mxu1 %v4536_v22  ;;  %v4684_v55 = vpack.c.bf16 %v3206_v53, %v3205_v52  ;;  %v3207_v56 = vld [vmem:[%s6425_s1 + $0x290] sm:$0xff]  ;;  %v3208_v57 = vld [vmem:[%s6425_s1 + $0x298] sm:$0xff]  ;;  %v3126_v61 = vld [vmem:[%s5323_s24 + $0x21] sm:$0xff] }
  0x23   : > { %4665 = vmatprep.subr.bf16.mxu0 %v5327_v23  ;;  %6474 = vst [vmem:[#allocation11_spill] sm:$0xff] %v5396_v49  ;;  %v218_v58 = vld [vmem:[%s5323_s24 + $0x9] sm:$0xff]  ;;  %v204_v60 = vld [vmem:[%s6425_s1 + $0x18] sm:$0xff]  ;;  %v4688_v62 = vpack.c.bf16 %v3208_v57, %v3207_v56  ;;  %v3209_v1 = vld [vmem:[%s6425_s1 + $0x2a0] sm:$0xff] }
  0x24   : > { %v203_v59 = vld [vmem:[%s6425_s1 + $0x10] sm:$0xff]  ;;  %v3210_v2 = vld [vmem:[%s6425_s1 + $0x2a8] sm:$0xff]  ;;  %v205_v3 = vld [vmem:[%s6425_s1 + $0x20] sm:$0xff] }
  0x25   : > { %4539 = vmatpush3.bf16.msra.mxu1 %v4536_v22  ;;  %v3127_v63 = vld [vmem:[%s5323_s24 + $0x31] sm:$0xff]  ;;  %v4560_v0 = vpack.c.bf16 %v204_v60, %v203_v59  ;;  %v206_v4 = vld [vmem:[%s6425_s1 + $0x28] sm:$0xff]  ;;  %v3128_v5 = vld [vmem:[%s5323_s24 + $0x39] sm:$0xff]  ;;  %v4692_v8 = vpack.c.bf16 %v3210_v2, %v3209_v1 }
  0x26   : > { %4667 = vmatpush3.bf16.msra.mxu0 %v5327_v23  ;;  %4541 = vmatprep.subr.bf16.mxu1 %v4540_v30  ;;  %v3129_v6 = vld [vmem:[%s5323_s24 + $0x49] sm:$0xff]  ;;  %v3212_v10 = vld [vmem:[%s6425_s1 + $0x2b8] sm:$0xff]  ;;  %v4564_v11 = vpack.c.bf16 %v206_v4, %v205_v3  ;;  %v3131_v16 = vld [vmem:[%s5323_s24 + $0x61] sm:$0xff] }
  0x27   : > { %4669 = vmatprep.subr.bf16.mxu0 %v5348_v31  ;;  %v3211_v9 = vld [vmem:[%s6425_s1 + $0x2b0] sm:$0xff]  ;;  %v208_v14 = vld [vmem:[%s6425_s1 + $0x38] sm:$0xff]  ;;  %v3213_v19 = vld [vmem:[%s6425_s1 + $0x2c0] sm:$0xff] }
  0x28   : > { %v207_v13 = vld [vmem:[%s6425_s1 + $0x30] sm:$0xff]  ;;  %v4696_v18 = vpack.c.bf16 %v3212_v10, %v3211_v9  ;;  %v3214_v20 = vld [vmem:[%s6425_s1 + $0x2c8] sm:$0xff]  ;;  %v209_v22 = vld [vmem:[%s6425_s1 + $0x40] sm:$0xff] }
  0x29   : > { %4543 = vmatpush3.bf16.msra.mxu1 %v4540_v30  ;;  %v3130_v15 = vld [vmem:[%s5323_s24 + $0x51] sm:$0xff]  ;;  %v4568_v21 = vpack.c.bf16 %v208_v14, %v207_v13  ;;  %v210_v24 = vld [vmem:[%s6425_s1 + $0x48] sm:$0xff]  ;;  %v3133_v26 = vld [vmem:[%s5323_s24 + $0x79] sm:$0xff]  ;;  %v4700_v27 = vpack.c.bf16 %v3214_v20, %v3213_v19 }
  0x2a   : > { %4671 = vmatpush3.bf16.msra.mxu0 %v5348_v31  ;;  %4545 = vmatprep.subr.bf16.mxu1 %v4544_v36  ;;  %v3132_v25 = vld [vmem:[%s5323_s24 + $0x69] sm:$0xff]  ;;  %v4572_v30 = vpack.c.bf16 %v210_v24, %v209_v22  ;;  %v212_v33 = vld [vmem:[%s6425_s1 + $0x58] sm:$0xff]  ;;  %v3134_v34 = vld [vmem:[%s5323_s24 + $0x81] sm:$0xff] }
  0x2b   : > { %4673 = vmatprep.subr.bf16.mxu0 %v5364_v37  ;;  %v3215_v28 = vld [vmem:[%s6425_s1 + $0x2d0] sm:$0xff]  ;;  %v3217_v38 = vld [vmem:[%s6425_s1 + $0x2e0] sm:$0xff]  ;;  %v3218_v39 = vld [vmem:[%s6425_s1 + $0x2e8] sm:$0xff] }
  0x2c   : > { %v211_v32 = vld [vmem:[%s6425_s1 + $0x50] sm:$0xff]  ;;  %v213_v41 = vld [vmem:[%s6425_s1 + $0x60] sm:$0xff]  ;;  %v4708_v46 = vpack.c.bf16 %v3218_v39, %v3217_v38  ;;  %v216_v52 = vld [vmem:[%s6425_s1 + $0x78] sm:$0xff] }
  0x2d   : > { %4547 = vmatpush3.bf16.msra.mxu1 %v4544_v36  ;;  %v5485_v35 = vld [vmem:[%s5323_s24 + $0x91] sm:$0xff]  ;;  %v4576_v40 = vpack.c.bf16 %v212_v33, %v211_v32  ;;  %v3136_v44 = vld [vmem:[%s5323_s24 + $0x99] sm:$0xff]  ;;  %v3137_v45 = vld [vmem:[%s5323_s24 + $0xa9] sm:$0xff] }
  0x2e   : > { %4675 = vmatpush3.bf16.msra.mxu0 %v5364_v37  ;;  %4549 = vmatprep.subr.bf16.mxu1 %v4548_v42  ;;  %v3219_v47 = vld [vmem:[%s6425_s1 + $0x2f0] sm:$0xff]  ;;  %v3253_v56 = vld [vmem:[%s6425_s1 + $0x300] sm:$0xff]  ;;  %v3254_v57 = vld [vmem:[%s6425_s1 + $0x308] sm:$0xff] }
  0x2f   : > { %4677 = vmatprep.subr.bf16.mxu0 %v5380_v43  ;;  %v215_v51 = vld [vmem:[%s6425_s1 + $0x70] sm:$0xff]  ;;  %v3061_v59 = vld [vmem:[%s6425_s1 + $0x100] sm:$0xff]  ;;  %v3062_v60 = vld [vmem:[%s6425_s1 + $0x108] sm:$0xff] }
  0x30   : > { %v3138_v53 = vld [vmem:[%s5323_s24 + $0xb1] sm:$0xff]  ;;  %v5544_v2 = vpack.c.bf16 %v3062_v60, %v3061_v59  ;;  %v5550_v3 = vld [vmem:[%s5323_s24 + $0x22] sm:$0xff]  ;;  %v5553_v4 = vld [vmem:[%s5323_s24 + $0xd9] sm:$0xff] }
  0x31   : > { %4551 = vmatpush3.bf16.msra.mxu1 %v4548_v42  ;;  %v214_v42 = vld [vmem:[%s6425_s1 + $0x68] sm:$0xff]  ;;  %v3256_v1 = vld [vmem:[%s6425_s1 + $0x318] sm:$0xff]  ;;  %v3263_v33 = vld [vmem:[%s6425_s1 + $0x350] sm:$0xff] }
  0x32   : > { %4679 = vmatpush3.bf16.msra.mxu0 %v5380_v43  ;;  %4553 = vmatprep.subr.bf16.mxu1 %v4552_v48  ;;  %v4580_v50 = vpack.c.bf16 %v214_v42, %v213_v41  ;;  %v3258_v9 = vld [vmem:[%s6425_s1 + $0x328] sm:$0xff]  ;;  %v5576_v13 = vld [vmem:[%s5323_s24 + $0xf1] sm:$0xff]  ;;  %v5591_v19 = vld [vmem:[%s5323_s24 + $0xf9] sm:$0xff] }
  0x33   : > { %4681 = vmatprep.subr.bf16.mxu0 %v5396_v49  ;;  %v5569_v10 = vld [vmem:[%s5323_s24 + $0xe1] sm:$0xff]  ;;  %v5579_v14 = vld [vmem:[%s5323_s24 + $0x4a] sm:$0xff]  ;;  %v5595_v20 = vld [vmem:[%s5323_s24 + $0x52] sm:$0xff] }
  0x34   : > { %v5601_v22 = vld [vmem:[%s5323_s24 + $0x62] sm:$0xff]  ;;  %v5642_v39 = vld [vmem:[%s5323_s24 + $0x139] sm:$0xff] }
  0x35   : > { %4555 = vmatpush3.bf16.msra.mxu1 %v4552_v48  ;;  %v3220_v48 = vld [vmem:[%s6425_s1 + $0x2f8] sm:$0xff]  ;;  %v5639_v38 = vld [vmem:[%s5323_s24 + $0x82] sm:$0xff]  ;;  %6479 = vst [vmem:[#allocation16_spill] sm:$0xff] %v5642_v39 }
  0x36   : > { %4683 = vmatpush3.bf16.msra.mxu0 %v5396_v49  ;;  %4557 = vmatprep.subr.bf16.mxu1 %v4556_v54  ;;  %v3265_v42 = vld [vmem:[%s6425_s1 + $0x360] sm:$0xff]  ;;  %v3302_v60 = vld [vmem:[%s6425_s1 + $0x388] sm:$0xff]  ;;  %v3072_v49 = vld [vmem:[%s6425_s1 + $0x158] sm:$0xff] }
  0x37   : > { %4685 = vmatprep.subr.bf16.mxu0 %v4684_v55  ;;  %v3301_v59 = vld [vmem:[%s6425_s1 + $0x380] sm:$0xff]  ;;  %v5819_v43 = vld [vmem:[%s5323_s24 + $0x152] sm:$0xff]  ;;  %v3110_v17 = vld [vmem:[%s6425_s1 + $0x188] sm:$0xff] }
  0x38   : > { %3837 = vmatmul.mubr.f32.vlgmr.msra.gmra.mrb[0].mxu1 %v218_v58  ;;  %v4584_v58 = vpack.c.bf16 %v216_v52, %v215_v51  ;;  %v3267_v51 = vld [vmem:[%s6425_s1 + $0x370] sm:$0xff]  ;;  %v3268_v52 = vld [vmem:[%s6425_s1 + $0x378] sm:$0xff]  ;;  %v3073_v37 = vld [vmem:[%s6425_s1 + $0x160] sm:$0xff] }
  0x39   : > { %4157 = vmatmul.mubr.f32.vlgmr.msra.gmra.mrb[0].mxu0 %v3126_v61  ;;  %4559 = vmatpush3.bf16.msra.mxu1 %v4556_v54  ;;  %v5517_v54 = vld [vmem:[%s5323_s24 + $0xc1] sm:$0xff]  ;;  %v3304_v12 = vld [vmem:[%s6425_s1 + $0x398] sm:$0xff] }
  0x3a   : > { %4687 = vmatpush3.bf16.msra.mxu0 %v4684_v55  ;;  %3839 = vmatprep.mubr.f32.mxu1 %v5343_v29  ;;  %v3216_v29 = vld [vmem:[%s6425_s1 + $0x2d8] sm:$0xff]  ;;  %v4712_v55 = vpack.c.bf16 %v3220_v48, %v3219_v47  ;;  %v5667_v48 = vld [vmem:[%s5323_s24 + $0xaa] sm:$0xff]  ;;  %v3203_v23 = vld [vmem:[%s5323_s24 + $0x182] sm:$0xff] }
  0x3b   : > { %4159 = vmatprep.mubr.f32.mxu0 %v3127_v63  ;;  %4689 = vmatprep.subr.bf16.mxu0 %v4688_v62  ;;  %v4704_v36 = vpack.c.bf16 %v3216_v29, %v3215_v28  ;;  %v5617_v28 = vld [vmem:[%s5323_s24 + $0x6a] sm:$0xff]  ;;  %v5620_v29 = vld [vmem:[%s5323_s24 + $0x121] sm:$0xff] }
  0x3c   : > { %3840 = vmatmul.mubr.f32.gmra.mrb[2].mxu1 %v3126_v61  ;;  %4561 = vmatprep.subr.bf16.mxu1 %v4560_v0  ;;  %v5533_v61 = vld [vmem:[%s5323_s24 + $0xc9] sm:$0xff]  ;;  %6477 = vst [vmem:[#allocation14_spill] sm:$0xff] %v5620_v29  ;;  %v5664_v47 = vld [vmem:[%s5323_s24 + $0x151] sm:$0xff] }
  0x3d   : > { %4160 = vmatmul.mubr.f32.gmra.mrb[2].mxu0 %v3128_v5  ;;  %3842 = vmatprep.mubr.f32.mxu1 %v3127_v63  ;;  %v4716_v63 = vpack.c.bf16 %v3254_v57, %v3253_v56  ;;  %6481 = vst [vmem:[#allocation18_spill] sm:$0xff] %v5664_v47  ;;  %v5686_v56 = vld [vmem:[%s5323_s24 + $0x169] sm:$0xff] }
  0x3e   : > { %4691 = vmatpush3.bf16.msra.mxu0 %v4688_v62  ;;  %4162 = vmatprep.mubr.f32.mxu0 %v3129_v6  ;;  %v5536_v62 = vld [vmem:[%s5323_s24 + $0x1a] sm:$0xff]  ;;  %6483 = vst [vmem:[#allocation20_spill] sm:$0xff] %v5686_v56  ;;  %v5689_v57 = vld [vmem:[%s5323_s24 + $0xc2] sm:$0xff] }
  0x3f   : > { %4693 = vmatprep.subr.bf16.mxu0 %v4692_v8  ;;  %4563 = vmatpush3.bf16.msra.mxu1 %v4560_v0  ;;  %v3255_v0 = vld [vmem:[%s6425_s1 + $0x310] sm:$0xff] }
  0x40   : > { %3843 = vmatmul.mubr.f32.gmra.mrb[4].mxu1 %v3128_v5  ;;  %4565 = vmatprep.subr.bf16.mxu1 %v4564_v11  ;;  %v5556_v5 = vld [vmem:[%s5323_s24 + $0x32] sm:$0xff] }
  0x41   : > { %4163 = vmatmul.mubr.f32.gmra.mrb[4].mxu0 %v3130_v15  ;;  %3845 = vmatprep.mubr.f32.mxu1 %v3129_v6  ;;  %v4720_v6 = vpack.c.bf16 %v3256_v1, %v3255_v0  ;;  %v5705_v0 = vld [vmem:[%s5323_s24 + $0xca] sm:$0xff]  ;;  %v169_v1 = vld [vmem:[%s5323_s24] sm:$0xff] }
  0x42   : > { %4695 = vmatpush3.bf16.msra.mxu0 %v4692_v8  ;;  %4165 = vmatprep.mubr.f32.mxu0 %v3131_v16  ;;  %v3257_v8 = vld [vmem:[%s6425_s1 + $0x320] sm:$0xff] }
  0x43   : > { %4697 = vmatprep.subr.bf16.mxu0 %v4696_v18  ;;  %4567 = vmatpush3.bf16.msra.mxu1 %v4564_v11  ;;  %v5573_v11 = vld [vmem:[%s5323_s24 + $0x3a] sm:$0xff] }
  0x44   : > { %3846 = vmatmul.mubr.f32.gmra.mrb[6].mxu1 %v3130_v15  ;;  %4569 = vmatprep.subr.bf16.mxu1 %v4568_v21  ;;  %v4724_v15 = vpack.c.bf16 %v3258_v9, %v3257_v8  ;;  %v5711_v8 = vpack.c.bf16 %v3302_v60, %v3301_v59  ;;  %v3063_v9 = vld [vmem:[%s6425_s1 + $0x110] sm:$0xff]  ;;  %v5772_v59 = vld [vmem:[%s5323_s24 + $0x48] sm:$0xff] }
  0x45   : > { %4166 = vmatmul.mubr.f32.gmra.mrb[6].mxu0 %v3132_v25  ;;  %3848 = vmatprep.mubr.f32.mxu1 %v3131_v16  ;;  %v3259_v16 = vld [vmem:[%s6425_s1 + $0x330] sm:$0xff]  ;;  %6487 = vst [vmem:[#allocation24_spill] sm:$0xff] %v5772_v59  ;;  %v5775_v60 = vld [vmem:[%s5323_s24 + $0x122] sm:$0xff] }
  0x46   : > { %4699 = vmatpush3.bf16.msra.mxu0 %v4696_v18  ;;  %4168 = vmatprep.mubr.f32.mxu0 %v3133_v26  ;;  %v3260_v18 = vld [vmem:[%s6425_s1 + $0x338] sm:$0xff] }
  0x47   : > { %4701 = vmatprep.subr.bf16.mxu0 %v4700_v27  ;;  %4571 = vmatpush3.bf16.msra.mxu1 %v4568_v21  ;;  %v5598_v21 = vld [vmem:[%s5323_s24 + $0x109] sm:$0xff]  ;;  %v4728_v24 = vpack.c.bf16 %v3260_v18, %v3259_v16 }
  0x48   : > { %3849 = vmatmul.mubr.f32.gmra.mrb[8].mxu1 %v3132_v25  ;;  %4573 = vmatprep.subr.bf16.mxu1 %v4572_v30  ;;  %6475 = vst [vmem:[#allocation12_spill] sm:$0xff] %v5598_v21  ;;  %v3261_v25 = vld [vmem:[%s6425_s1 + $0x340] sm:$0xff]  ;;  %v170_v16 = vld [vmem:[%s5323_s24 + $0x8] sm:$0xff] }
  0x49   : > { %4169 = vmatmul.mubr.f32.gmra.mrb[8].mxu0 %v3134_v34  ;;  %3851 = vmatprep.mubr.f32.mxu1 %v3133_v26  ;;  %v3262_v26 = vld [vmem:[%s6425_s1 + $0x348] sm:$0xff] }
  0x4a   : > { %4703 = vmatpush3.bf16.msra.mxu0 %v4700_v27  ;;  %4171 = vmatprep.mubr.f32.mxu0 %v5485_v35  ;;  %v5613_v27 = vld [vmem:[%s5323_s24 + $0x111] sm:$0xff]  ;;  %v4732_v32 = vpack.c.bf16 %v3262_v26, %v3261_v25  ;;  %v5724_v18 = vld [vmem:[%s5323_s24 + $0xe2] sm:$0xff] }
  0x4b   : > { %4705 = vmatprep.subr.bf16.mxu0 %v4704_v36  ;;  %4575 = vmatpush3.bf16.msra.mxu1 %v4572_v30  ;;  %6476 = vst [vmem:[#allocation13_spill] sm:$0xff] %v5613_v27  ;;  %v5623_v30 = vld [vmem:[%s5323_s24 + $0x7a] sm:$0xff]  ;;  %v5730_v25 = vld [vmem:[%s5323_s24 + $0xf2] sm:$0xff] }
  0x4c   : > { %3852 = vmatmul.mubr.f32.gmra.mrb[10].mxu1 %v3134_v34  ;;  %4577 = vmatprep.subr.bf16.mxu1 %v4576_v40  ;;  %v3264_v34 = vld [vmem:[%s6425_s1 + $0x358] sm:$0xff] }
  0x4d   : > { %4172 = vmatmul.mubr.f32.gmra.mrb[10].mxu0 %v3136_v44  ;;  %3854 = vmatprep.mubr.f32.mxu1 %v5485_v35  ;;  %v4736_v41 = vpack.c.bf16 %v3264_v34, %v3263_v33  ;;  %v3066_v33 = vld [vmem:[%s6425_s1 + $0x128] sm:$0xff]  ;;  %v5742_v34 = vld [vmem:[%s5323_s24 + $0x20] sm:$0xff] }
  0x4e   : > { %4707 = vmatpush3.bf16.msra.mxu0 %v4704_v36  ;;  %4174 = vmatprep.mubr.f32.mxu0 %v3137_v45  ;;  %v5635_v36 = vld [vmem:[%s5323_s24 + $0x129] sm:$0xff] }
  0x4f   : > { %4709 = vmatprep.subr.bf16.mxu0 %v4708_v46  ;;  %4579 = vmatpush3.bf16.msra.mxu1 %v4576_v40  ;;  %6478 = vst [vmem:[#allocation15_spill] sm:$0xff] %v5635_v36  ;;  %v5645_v40 = vld [vmem:[%s5323_s24 + $0x92] sm:$0xff] }
  0x50   : > { %3855 = vmatmul.mubr.f32.gmra.mrb[12].mxu1 %v3136_v44  ;;  %4581 = vmatprep.subr.bf16.mxu1 %v4580_v50  ;;  %v3266_v44 = vld [vmem:[%s6425_s1 + $0x368] sm:$0xff] }
  0x51   : > { %4175 = vmatmul.mubr.f32.gmra.mrb[12].mxu0 %v3138_v53  ;;  %3857 = vmatprep.mubr.f32.mxu1 %v3137_v45  ;;  %v5657_v45 = vld [vmem:[%s5323_s24 + $0x141] sm:$0xff] }
  0x52   : > { %4711 = vmatpush3.bf16.msra.mxu0 %v4708_v46  ;;  %4177 = vmatprep.mubr.f32.mxu0 %v5517_v54  ;;  %6480 = vst [vmem:[#allocation17_spill] sm:$0xff] %v5657_v45  ;;  %v5661_v46 = vld [vmem:[%s5323_s24 + $0x9a] sm:$0xff] }
  0x53   : > { %4713 = vmatprep.subr.bf16.mxu0 %v4712_v55  ;;  %4583 = vmatpush3.bf16.msra.mxu1 %v4580_v50  ;;  %v4740_v50 = vpack.c.bf16 %v3266_v44, %v3265_v42  ;;  %v5750_v42 = vld [vmem:[%s5323_s24 + $0x30] sm:$0xff] }
  0x54   : > { %3858 = vmatmul.mubr.f32.gmra.mrb[14].mxu1 %v3138_v53  ;;  %4585 = vmatprep.subr.bf16.mxu1 %v4584_v58  ;;  %v5679_v53 = vld [vmem:[%s5323_s24 + $0x159] sm:$0xff]  ;;  %6485 = vst [vmem:[#allocation22_spill] sm:$0xff] %v5750_v42  ;;  %v5753_v44 = vld [vmem:[%s5323_s24 + $0x10a] sm:$0xff] }
  0x55   : > { %4178 = vmatmul.mubr.f32.gmra.mrb[14].mxu0 %v5533_v61  ;;  %3860 = vmatprep.mubr.f32.mxu1 %v5517_v54  ;;  %6482 = vst [vmem:[#allocation19_spill] sm:$0xff] %v5679_v53 }
  0x56   : > { %4715 = vmatpush3.bf16.msra.mxu0 %v4712_v55  ;;  %4236 = vmatprep.mubr.f32.mxu0 %v5536_v62  ;;  %v5683_v55 = vld [vmem:[%s5323_s24 + $0xb2] sm:$0xff] }
  0x57   : > { %4717 = vmatprep.subr.bf16.mxu0 %v4716_v63  ;;  %4587 = vmatpush3.bf16.msra.mxu1 %v4584_v58  ;;  %v4744_v58 = vpack.c.bf16 %v3268_v52, %v3267_v51  ;;  %v3068_v51 = vld [vmem:[%s6425_s1 + $0x138] sm:$0xff] }
  0x58   : > { %3861 = vmatmul.mubr.f32.gmra.mrb[16].mxu1 %v5533_v61  ;;  %4589 = vmatprep.subr.bf16.mxu1 %v5544_v2  ;;  %v5765_v52 = vld [vmem:[%s5323_s24 + $0x38] sm:$0xff] }
  0x59   : > { %4237 = vmatmul.mubr.f32.vlgmr.msra.gmra.mrb[0].mxu0 %v5550_v3  ;;  %3863 = vmatprep.mubr.f32.mxu1 %v5553_v4  ;;  %6486 = vst [vmem:[#allocation23_spill] sm:$0xff] %v5765_v52 }
  0x5a   : > { %4719 = vmatpush3.bf16.msra.mxu0 %v4716_v63  ;;  %4239 = vmatprep.mubr.f32.mxu0 %v5556_v5  ;;  %v5701_v63 = vld [vmem:[%s5323_s24 + $0x171] sm:$0xff] }
  0x5b   : > { %4721 = vmatprep.subr.bf16.mxu0 %v4720_v6  ;;  %6484 = vst [vmem:[#allocation21_spill] sm:$0xff] %v5701_v63 }
  0x5c   : > { %3864 = vmatmul.mubr.f32.gmra.mrb[18].mxu1 %v5569_v10 }
  0x5d   : > { %4240 = vmatmul.mubr.f32.gmra.mrb[2].mxu0 %v5573_v11  ;;  %3866 = vmatprep.mubr.f32.mxu1 %v5576_v13 }
  0x5e   : > { %4242 = vmatprep.mubr.f32.mxu0 %v5579_v14  ;;  %4723 = vmatpush3.bf16.msra.mxu0 %v4720_v6  ;;  %v5709_v6 = vld [vmem:[%s5323_s24 + $0xda] sm:$0xff] }
  0x5f   : > { %4725 = vmatprep.subr.bf16.mxu0 %v4724_v15 }
  0x60   : > { %3867 = vmatmul.mubr.f32.gmra.mrb[20].mxu1 %v5591_v19 }
  0x61   : > { %4243 = vmatmul.mubr.f32.gmra.mrb[4].mxu0 %v5595_v20  ;;  %3869 = vmatprep.mubr.f32.mxu1 %v5598_v21  ;;  %v3308_v21 = vld [vmem:[%s6425_s1 + $0x3b8] sm:$0xff] }
  0x62   : > { %4245 = vmatprep.mubr.f32.mxu0 %v5601_v22  ;;  %4727 = vmatpush3.bf16.msra.mxu0 %v4724_v15  ;;  %v3064_v15 = vld [vmem:[%s6425_s1 + $0x118] sm:$0xff] }
  0x63   : > { %4729 = vmatprep.subr.bf16.mxu0 %v4728_v24  ;;  %v4592_v26 = vpack.c.bf16 %v3064_v15, %v3063_v9  ;;  %v3069_v9 = vld [vmem:[%s6425_s1 + $0x140] sm:$0xff]  ;;  %v3070_v15 = vld [vmem:[%s6425_s1 + $0x148] sm:$0xff] }
  0x64   : > { %3870 = vmatmul.mubr.f32.gmra.mrb[22].mxu1 %v5613_v27  ;;  %v3303_v27 = vld [vmem:[%s6425_s1 + $0x390] sm:$0xff] }
  0x65   : > { %4246 = vmatmul.mubr.f32.gmra.mrb[6].mxu0 %v5617_v28  ;;  %3872 = vmatprep.mubr.f32.mxu1 %v5620_v29 }
  0x66   : > { %4248 = vmatprep.mubr.f32.mxu0 %v5623_v30  ;;  %4731 = vmatpush3.bf16.msra.mxu0 %v4728_v24  ;;  %v5727_v24 = vld [vmem:[%s5323_s24 + $0x18] sm:$0xff] }
  0x67   : > { %4733 = vmatprep.subr.bf16.mxu0 %v4732_v32 }
  0x68   : > { %3873 = vmatmul.mubr.f32.gmra.mrb[24].mxu1 %v5635_v36  ;;  %v3109_v36 = vld [vmem:[%s6425_s1 + $0x180] sm:$0xff] }
  0x69   : > { %4249 = vmatmul.mubr.f32.gmra.mrb[8].mxu0 %v5639_v38  ;;  %3875 = vmatprep.mubr.f32.mxu1 %v5642_v39  ;;  %v5879_v29 = vpack.c.bf16 %v3110_v17, %v3109_v36  ;;  %v5894_v17 = vld [vmem:[%s5323_s24 + $0xd8] sm:$0xff]  ;;  %v3305_v36 = vld [vmem:[%s6425_s1 + $0x3a0] sm:$0xff] }
  0x6a   : > { %4251 = vmatprep.mubr.f32.mxu0 %v5645_v40  ;;  %4735 = vmatpush3.bf16.msra.mxu0 %v4732_v32  ;;  %v3065_v32 = vld [vmem:[%s6425_s1 + $0x120] sm:$0xff] }
  0x6b   : > { %4737 = vmatprep.subr.bf16.mxu0 %v4736_v41 }
  0x6c   : > { %3876 = vmatmul.mubr.f32.gmra.mrb[26].mxu1 %v5657_v45  ;;  %v3076_v45 = vld [vmem:[%s6425_s1 + $0x178] sm:$0xff] }
  0x6d   : > { %4252 = vmatmul.mubr.f32.gmra.mrb[10].mxu0 %v5661_v46  ;;  %3878 = vmatprep.mubr.f32.mxu1 %v5664_v47  ;;  %v3075_v47 = vld [vmem:[%s6425_s1 + $0x170] sm:$0xff] }
  0x6e   : > { %4254 = vmatprep.mubr.f32.mxu0 %v5667_v48  ;;  %4739 = vmatpush3.bf16.msra.mxu0 %v4736_v41  ;;  %v5747_v41 = vld [vmem:[%s5323_s24 + $0xfa] sm:$0xff]  ;;  %v4616_v39 = vpack.c.bf16 %v3076_v45, %v3075_v47  ;;  %v3204_v45 = vld [vmem:[%s5323_s24 + $0x18a] sm:$0xff] }
  0x6f   : > { %4741 = vmatprep.subr.bf16.mxu0 %v4740_v50  ;;  %v5877_v47 = vld [vmem:[%s5323_s24 + $0xc0] sm:$0xff] }
  0x70   : > { %3879 = vmatmul.mubr.f32.gmra.mrb[28].mxu1 %v5679_v53  ;;  %v5841_v53 = vld [vmem:[%s5323_s24 + $0x16a] sm:$0xff]  ;;  %6497 = vst [vmem:[#allocation34_spill] sm:$0xff] %v5877_v47 }
  0x71   : > { %4255 = vmatmul.mubr.f32.gmra.mrb[12].mxu0 %v5683_v55  ;;  %3881 = vmatprep.mubr.f32.mxu1 %v5686_v56  ;;  %v3074_v56 = vld [vmem:[%s6425_s1 + $0x168] sm:$0xff] }
  0x72   : > { %4257 = vmatprep.mubr.f32.mxu0 %v5689_v57  ;;  %4743 = vmatpush3.bf16.msra.mxu0 %v4740_v50  ;;  %v4596_v50 = vpack.c.bf16 %v3066_v33, %v3065_v32  ;;  %v5794_v32 = vld [vmem:[%s5323_s24 + $0x60] sm:$0xff]  ;;  %v4612_v31 = vpack.c.bf16 %v3074_v56, %v3073_v37  ;;  %v5857_v37 = vld [vmem:[%s5323_s24 + $0x172] sm:$0xff]  ;;  %v5860_v56 = vld [vmem:[%s5323_s24 + $0xa8] sm:$0xff] }
  0x73   : > { %4745 = vmatprep.subr.bf16.mxu0 %v4744_v58  ;;  %6489 = vst [vmem:[#allocation26_spill] sm:$0xff] %v5794_v32  ;;  %v5797_v33 = vld [vmem:[%s5323_s24 + $0x13a] sm:$0xff]  ;;  %6495 = vst [vmem:[#allocation32_spill] sm:$0xff] %v5860_v56 }
  0x74   : > { %3882 = vmatmul.mubr.f32.gmra.mrb[30].mxu1 %v5701_v63 }
  0x75   : > { %4258 = vmatmul.mubr.f32.gmra.mrb[14].mxu0 %v5705_v0  ;;  %3916 = vmatprep.mubr.f32.mxu1 %v169_v1 }
  0x76   : > { %4260 = vmatprep.mubr.f32.mxu0 %v5709_v6  ;;  %4747 = vmatpush3.bf16.msra.mxu0 %v4744_v58  ;;  %v5769_v58 = vld [vmem:[%s5323_s24 + $0x112] sm:$0xff] }
  0x77   : > { %4749 = vmatprep.subr.bf16.mxu0 %v5711_v8 }
  0x78   : > { %3917 = vmatmul.mubr.f32.vlgmr.msra.gmra.mrb[0].mxu1 %v170_v16  ;;  %v5787_v16 = vld [vmem:[%s5323_s24 + $0x50] sm:$0xff] }
  0x79   : > { %4261 = vmatmul.mubr.f32.gmra.mrb[16].mxu0 %v5724_v18  ;;  %4591 = vmatpush3.bf16.msra.mxu1 %v5544_v2  ;;  %v3067_v2 = vld [vmem:[%s6425_s1 + $0x130] sm:$0xff]  ;;  %6488 = vst [vmem:[#allocation25_spill] sm:$0xff] %v5787_v16 }
  0x7a   : > { %3919 = vmatprep.mubr.f32.mxu1 %v5727_v24  ;;  %4263 = vmatprep.mubr.f32.mxu0 %v5730_v25  ;;  %v4600_v1 = vpack.c.bf16 %v3068_v51, %v3067_v2  ;;  %v4604_v2 = vpack.c.bf16 %v3070_v15, %v3069_v9  ;;  %v3071_v51 = vld [vmem:[%s6425_s1 + $0x150] sm:$0xff]  ;;  %v5813_v9 = vld [vmem:[%s5323_s24 + $0x142] sm:$0xff]  ;;  %v5816_v15 = vld [vmem:[%s5323_s24 + $0x78] sm:$0xff] }
  0x7b   : > { %4593 = vmatprep.subr.bf16.mxu1 %v4592_v26  ;;  %6491 = vst [vmem:[#allocation28_spill] sm:$0xff] %v5816_v15  ;;  %v4608_v63 = vpack.c.bf16 %v3072_v49, %v3071_v51  ;;  %v5835_v49 = vld [vmem:[%s5323_s24 + $0x15a] sm:$0xff]  ;;  %v5838_v51 = vld [vmem:[%s5323_s24 + $0x90] sm:$0xff] }
  0x7c   : > { %3920 = vmatmul.mubr.f32.gmra.mrb[2].mxu1 %v5742_v34  ;;  %6493 = vst [vmem:[#allocation30_spill] sm:$0xff] %v5838_v51 }
  0x7d   : > { %4264 = vmatmul.mubr.f32.gmra.mrb[18].mxu0 %v5747_v41  ;;  %3922 = vmatprep.mubr.f32.mxu1 %v5750_v42 }
  0x7e   : > { %4266 = vmatprep.mubr.f32.mxu0 %v5753_v44  ;;  %4595 = vmatpush3.bf16.msra.mxu1 %v4592_v26  ;;  %v5791_v26 = vld [vmem:[%s5323_s24 + $0x12a] sm:$0xff] }
  0x7f   : > { %4597 = vmatprep.subr.bf16.mxu1 %v4596_v50 }
  0x80   : > { %3923 = vmatmul.mubr.f32.gmra.mrb[4].mxu1 %v5765_v52 }
  0x81   : > { %4267 = vmatmul.mubr.f32.gmra.mrb[20].mxu0 %v5769_v58  ;;  %3925 = vmatprep.mubr.f32.mxu1 %v5772_v59 }
  0x82   : > { %4269 = vmatprep.mubr.f32.mxu0 %v5775_v60  ;;  %4599 = vmatpush3.bf16.msra.mxu1 %v4596_v50  ;;  %v5809_v50 = vld [vmem:[%s5323_s24 + $0x68] sm:$0xff] }
  0x83   : > { %4601 = vmatprep.subr.bf16.mxu1 %v4600_v1  ;;  %6490 = vst [vmem:[#allocation27_spill] sm:$0xff] %v5809_v50 }
  0x84   : > { %3926 = vmatmul.mubr.f32.gmra.mrb[6].mxu1 %v5787_v16 }
  0x85   : > { %4270 = vmatmul.mubr.f32.gmra.mrb[22].mxu0 %v5791_v26  ;;  %3928 = vmatprep.mubr.f32.mxu1 %v5794_v32 }
  0x86   : > { %4272 = vmatprep.mubr.f32.mxu0 %v5797_v33  ;;  %4603 = vmatpush3.bf16.msra.mxu1 %v4600_v1  ;;  %v5831_v1 = vld [vmem:[%s5323_s24 + $0x80] sm:$0xff] }
  0x87   : > { %4605 = vmatprep.subr.bf16.mxu1 %v4604_v2  ;;  %6492 = vst [vmem:[#allocation29_spill] sm:$0xff] %v5831_v1 }
  0x88   : > { %3929 = vmatmul.mubr.f32.gmra.mrb[8].mxu1 %v5809_v50 }
  0x89   : > { %4273 = vmatmul.mubr.f32.gmra.mrb[24].mxu0 %v5813_v9  ;;  %3931 = vmatprep.mubr.f32.mxu1 %v5816_v15 }
  0x8a   : > { %4275 = vmatprep.mubr.f32.mxu0 %v5819_v43  ;;  %4607 = vmatpush3.bf16.msra.mxu1 %v4604_v2  ;;  %v5853_v2 = vld [vmem:[%s5323_s24 + $0x98] sm:$0xff] }
  0x8b   : > { %4609 = vmatprep.subr.bf16.mxu1 %v4608_v63  ;;  %6494 = vst [vmem:[#allocation31_spill] sm:$0xff] %v5853_v2 }
  0x8c   : > { %3932 = vmatmul.mubr.f32.gmra.mrb[10].mxu1 %v5831_v1 }
  0x8d   : > { %4276 = vmatmul.mubr.f32.gmra.mrb[26].mxu0 %v5835_v49  ;;  %3934 = vmatprep.mubr.f32.mxu1 %v5838_v51 }
  0x8e   : > { %4278 = vmatprep.mubr.f32.mxu0 %v5841_v53  ;;  %4611 = vmatpush3.bf16.msra.mxu1 %v4608_v63  ;;  %v5873_v63 = vld [vmem:[%s5323_s24 + $0xb0] sm:$0xff] }
  0x8f   : > { %4613 = vmatprep.subr.bf16.mxu1 %v4612_v31  ;;  %6496 = vst [vmem:[#allocation33_spill] sm:$0xff] %v5873_v63 }
  0x90   : > { %3935 = vmatmul.mubr.f32.gmra.mrb[12].mxu1 %v5853_v2 }
  0x91   : > { %4279 = vmatmul.mubr.f32.gmra.mrb[28].mxu0 %v5857_v37  ;;  %3937 = vmatprep.mubr.f32.mxu1 %v5860_v56 }
  0x92   : > { %4281 = vmatprep.mubr.f32.mxu0 %v3203_v23  ;;  %4615 = vmatpush3.bf16.msra.mxu1 %v4612_v31  ;;  %v5890_v23 = vld [vmem:[%s5323_s24 + $0xc8] sm:$0xff]  ;;  %v4752_v31 = vpack.c.bf16 %v3304_v12, %v3303_v27  ;;  %v5912_v12 = vld [vmem:[%s5323_s24 + $0xf0] sm:$0xff] }
  0x93   : > { %4617 = vmatprep.subr.bf16.mxu1 %v4616_v39  ;;  %6498 = vst [vmem:[#allocation35_spill] sm:$0xff] %v5890_v23 }
  0x94   : > { %3938 = vmatmul.mubr.f32.gmra.mrb[14].mxu1 %v5873_v63 }
  0x95   : > { %4282 = vmatmul.mubr.f32.gmra.mrb[30].mxu0 %v3204_v45  ;;  %3940 = vmatprep.mubr.f32.mxu1 %v5877_v47  ;;  %v3306_v45 = vld [vmem:[%s6425_s1 + $0x3a8] sm:$0xff] }
  0x96   : > { %4316 = vmatprep.mubr.f32.mxu0 %v5750_v42  ;;  %4619 = vmatpush3.bf16.msra.mxu1 %v4616_v39  ;;  %v5907_v39 = vld [vmem:[%s5323_s24 + $0xe0] sm:$0xff]  ;;  %v4756_v27 = vpack.c.bf16 %v3306_v45, %v3305_v36  ;;  %v5928_v36 = vld [vmem:[%s5323_s24 + $0x108] sm:$0xff] }
  0x97   : > { %4621 = vmatprep.subr.bf16.mxu1 %v5879_v29  ;;  %v717_v42 = vld [vmem:[%s5323_s24 + $0xa] sm:$0xff] }
  0x98   : > { %3941 = vmatmul.mubr.f32.gmra.mrb[16].mxu1 %v5890_v23 }
  0x99   : > { %4317 = vmatmul.mubr.f32.vlgmr.msra.gmra.mrb[0].mxu0 %v5765_v52  ;;  %3943 = vmatprep.mubr.f32.mxu1 %v5894_v17  ;;  %v3307_v52 = vld [vmem:[%s6425_s1 + $0x3b0] sm:$0xff] }
  0x9a   : > { %4751 = vmatpush3.bf16.msra.mxu0 %v5711_v8  ;;  %4319 = vmatprep.mubr.f32.mxu0 %v5772_v59  ;;  %v5924_v8 = vld [vmem:[%s5323_s24 + $0xf8] sm:$0xff]  ;;  %v4760_v45 = vpack.c.bf16 %v3308_v21, %v3307_v52  ;;  %v3309_v59 = vld [vmem:[%s6425_s1 + $0x3c0] sm:$0xff] }
  0x9b   : > { %4753 = vmatprep.subr.bf16.mxu0 %v4752_v31  ;;  %v5944_v21 = vld [vmem:[%s5323_s24 + $0x120] sm:$0xff] }
  0x9c   : > { %3944 = vmatmul.mubr.f32.gmra.mrb[18].mxu1 %v5907_v39 }
  0x9d   : > { %4320 = vmatmul.mubr.f32.gmra.mrb[2].mxu0 %v5787_v16  ;;  %3946 = vmatprep.mubr.f32.mxu1 %v5912_v12  ;;  %v3310_v16 = vld [vmem:[%s6425_s1 + $0x3c8] sm:$0xff] }
  0x9e   : > { %4322 = vmatprep.mubr.f32.mxu0 %v5794_v32  ;;  %4755 = vmatpush3.bf16.msra.mxu0 %v4752_v31  ;;  %v5940_v31 = vld [vmem:[%s5323_s24 + $0x110] sm:$0xff]  ;;  %v4764_v52 = vpack.c.bf16 %v3310_v16, %v3309_v59  ;;  %v5960_v59 = vld [vmem:[%s5323_s24 + $0x138] sm:$0xff] }
  0x9f   : > { %4757 = vmatprep.subr.bf16.mxu0 %v4756_v27  ;;  %v3311_v32 = vld [vmem:[%s6425_s1 + $0x3d0] sm:$0xff] }
  0xa0   : > { %3947 = vmatmul.mubr.f32.gmra.mrb[20].mxu1 %v5924_v8 }
  0xa1   : > { %4323 = vmatmul.mubr.f32.gmra.mrb[4].mxu0 %v5809_v50  ;;  %3949 = vmatprep.mubr.f32.mxu1 %v5928_v36  ;;  %v3312_v50 = vld [vmem:[%s6425_s1 + $0x3d8] sm:$0xff] }
  0xa2   : > { %4325 = vmatprep.mubr.f32.mxu0 %v5816_v15  ;;  %4759 = vmatpush3.bf16.msra.mxu0 %v4756_v27  ;;  %v5956_v15 = vld [vmem:[%s5323_s24 + $0x128] sm:$0xff]  ;;  %v4768_v16 = vpack.c.bf16 %v3312_v50, %v3311_v32  ;;  %v3313_v27 = vld [vmem:[%s6425_s1 + $0x3e0] sm:$0xff]  ;;  %v5976_v32 = vld [vmem:[%s5323_s24 + $0x150] sm:$0xff] }
  0xa3   : > { %4761 = vmatprep.subr.bf16.mxu0 %v4760_v45 }
  0xa4   : > { %3950 = vmatmul.mubr.f32.gmra.mrb[22].mxu1 %v5940_v31 }
  0xa5   : > { %4326 = vmatmul.mubr.f32.gmra.mrb[6].mxu0 %v5831_v1  ;;  %3952 = vmatprep.mubr.f32.mxu1 %v5944_v21  ;;  %v3314_v1 = vld [vmem:[%s6425_s1 + $0x3e8] sm:$0xff] }
  0xa6   : > { %4328 = vmatprep.mubr.f32.mxu0 %v5838_v51  ;;  %4763 = vmatpush3.bf16.msra.mxu0 %v4760_v45  ;;  %v5972_v51 = vld [vmem:[%s5323_s24 + $0x140] sm:$0xff]  ;;  %v4772_v50 = vpack.c.bf16 %v3314_v1, %v3313_v27  ;;  %v3315_v45 = vld [vmem:[%s6425_s1 + $0x3f0] sm:$0xff]  ;;  %v5992_v1 = vld [vmem:[%s5323_s24 + $0x168] sm:$0xff] }
  0xa7   : > { %4765 = vmatprep.subr.bf16.mxu0 %v4764_v52  ;;  %v3349_v27 = vld [vmem:[%s6425_s1 + $0x400] sm:$0xff] }
  0xa8   : > { %3953 = vmatmul.mubr.f32.gmra.mrb[24].mxu1 %v5956_v15 }
  0xa9   : > { %4329 = vmatmul.mubr.f32.gmra.mrb[8].mxu0 %v5853_v2  ;;  %3955 = vmatprep.mubr.f32.mxu1 %v5960_v59  ;;  %v3316_v2 = vld [vmem:[%s6425_s1 + $0x3f8] sm:$0xff] }
  0xaa   : > { %4331 = vmatprep.mubr.f32.mxu0 %v5860_v56  ;;  %4767 = vmatpush3.bf16.msra.mxu0 %v4764_v52  ;;  %v5988_v56 = vld [vmem:[%s5323_s24 + $0x158] sm:$0xff]  ;;  %v4776_v52 = vpack.c.bf16 %v3316_v2, %v3315_v45  ;;  %v716_v2 = vld [vmem:[%s5323_s24 + $0x2] sm:$0xff]  ;;  %v3111_v45 = vld [vmem:[%s6425_s1 + $0x190] sm:$0xff] }
  0xab   : > { %4769 = vmatprep.subr.bf16.mxu0 %v4768_v16 }
  0xac   : > { %3956 = vmatmul.mubr.f32.gmra.mrb[26].mxu1 %v5972_v51 }
  0xad   : > { %4332 = vmatmul.mubr.f32.gmra.mrb[10].mxu0 %v5873_v63  ;;  %3958 = vmatprep.mubr.f32.mxu1 %v5976_v32  ;;  %v3350_v63 = vld [vmem:[%s6425_s1 + $0x408] sm:$0xff] }
  0xae   : > { %4334 = vmatprep.mubr.f32.mxu0 %v5877_v47  ;;  %4771 = vmatpush3.bf16.msra.mxu0 %v4768_v16  ;;  %v6004_v47 = vld [vmem:[%s5323_s24 + $0x170] sm:$0xff]  ;;  %v6008_v16 = vpack.c.bf16 %v3350_v63, %v3349_v27  ;;  %v3113_v63 = vld [vmem:[%s6425_s1 + $0x1a0] sm:$0xff]  ;;  %v3114_v27 = vld [vmem:[%s6425_s1 + $0x1a8] sm:$0xff] }
  0xaf   : > { %4773 = vmatprep.subr.bf16.mxu0 %v4772_v50 }
  0xb0   : > { %3959 = vmatmul.mubr.f32.gmra.mrb[28].mxu1 %v5988_v56 }
  0xb1   : > { %4335 = vmatmul.mubr.f32.gmra.mrb[12].mxu0 %v5890_v23  ;;  %3961 = vmatprep.mubr.f32.mxu1 %v5992_v1  ;;  %v3112_v23 = vld [vmem:[%s6425_s1 + $0x198] sm:$0xff] }
  0xb2   : > { %4337 = vmatprep.mubr.f32.mxu0 %v5894_v17  ;;  %4775 = vmatpush3.bf16.msra.mxu0 %v4772_v50  ;;  %v4624_v50 = vpack.c.bf16 %v3112_v23, %v3111_v45  ;;  %v4628_v23 = vpack.c.bf16 %v3114_v27, %v3113_v63  ;;  %v3122_v45 = vld [vmem:[%s6425_s1 + $0x1e8] sm:$0xff]  ;;  %v3124_v63 = vld [vmem:[%s6425_s1 + $0x1f8] sm:$0xff] }
  0xb3   : > { %4777 = vmatprep.subr.bf16.mxu0 %v4776_v52  ;;  %v3251_v27 = vld [vmem:[%s5323_s24 + $0x198] sm:$0xff] }
  0xb4   : > { %3962 = vmatmul.mubr.f32.gmra.mrb[30].mxu1 %v6004_v47 }
  0xb5   : > { %4338 = vmatmul.mubr.f32.gmra.mrb[14].mxu0 %v5907_v39  ;;  %3996 = vmatprep.mubr.f32.mxu1 %v716_v2  ;;  %v3120_v2 = vld [vmem:[%s6425_s1 + $0x1d8] sm:$0xff] }
  0xb6   : > { %4340 = vmatprep.mubr.f32.mxu0 %v5912_v12  ;;  %4779 = vmatpush3.bf16.msra.mxu0 %v4776_v52  ;;  %v3116_v52 = vld [vmem:[%s6425_s1 + $0x1b8] sm:$0xff] }
  0xb7   : > { %4781 = vmatprep.subr.bf16.mxu0 %v6008_v16 }
  0xb8   : > { %3997 = vmatmul.mubr.f32.vlgmr.msra.gmra.mrb[0].mxu1 %v717_v42  ;;  %v3115_v42 = vld [vmem:[%s6425_s1 + $0x1b0] sm:$0xff] }
  0xb9   : > { %4341 = vmatmul.mubr.f32.gmra.mrb[16].mxu0 %v5924_v8  ;;  %4623 = vmatpush3.bf16.msra.mxu1 %v5879_v29  ;;  %v3118_v29 = vld [vmem:[%s6425_s1 + $0x1c8] sm:$0xff] }
  0xba   : > { %3999 = vmatprep.mubr.f32.mxu1 %v5536_v62  ;;  %4343 = vmatprep.mubr.f32.mxu0 %v5928_v36  ;;  %v4632_v62 = vpack.c.bf16 %v3116_v52, %v3115_v42  ;;  %v3351_v42 = vld [vmem:[%s6425_s1 + $0x410] sm:$0xff] }
  0xbb   : > { %4625 = vmatprep.subr.bf16.mxu1 %v4624_v50  ;;  %v3271_v52 = vld [vmem:[%s5323_s24 + $0x49] sm:$0xff] }
  0xbc   : > { %4000 = vmatmul.mubr.f32.gmra.mrb[2].mxu1 %v5550_v3  ;;  %v3117_v3 = vld [vmem:[%s6425_s1 + $0x1c0] sm:$0xff] }
  0xbd   : > { %4344 = vmatmul.mubr.f32.gmra.mrb[18].mxu0 %v5940_v31  ;;  %4002 = vmatprep.mubr.f32.mxu1 %v5556_v5  ;;  %v4636_v5 = vpack.c.bf16 %v3118_v29, %v3117_v3  ;;  %v3354_v3 = vld [vmem:[%s6425_s1 + $0x428] sm:$0xff] }
  0xbe   : > { %4346 = vmatprep.mubr.f32.mxu0 %v5944_v21  ;;  %4627 = vmatpush3.bf16.msra.mxu1 %v4624_v50  ;;  %v3123_v50 = vld [vmem:[%s6425_s1 + $0x1f0] sm:$0xff]  ;;  %v3273_v29 = vld [vmem:[%s5323_s24 + $0x61] sm:$0xff] }
  0xbf   : > { %4629 = vmatprep.subr.bf16.mxu1 %v4628_v23 }
  0xc0   : > { %4003 = vmatmul.mubr.f32.gmra.mrb[4].mxu1 %v5573_v11  ;;  %v3119_v11 = vld [vmem:[%s6425_s1 + $0x1d0] sm:$0xff] }
  0xc1   : > { %4347 = vmatmul.mubr.f32.gmra.mrb[20].mxu0 %v5956_v15  ;;  %4005 = vmatprep.mubr.f32.mxu1 %v5579_v14  ;;  %v4640_v14 = vpack.c.bf16 %v3120_v2, %v3119_v11  ;;  %v3356_v11 = vld [vmem:[%s6425_s1 + $0x438] sm:$0xff] }
  0xc2   : > { %4349 = vmatprep.mubr.f32.mxu0 %v5960_v59  ;;  %4631 = vmatpush3.bf16.msra.mxu1 %v4628_v23  ;;  %v3252_v23 = vld [vmem:[%s5323_s24 + $0x1a0] sm:$0xff] }
  0xc3   : > { %4633 = vmatprep.subr.bf16.mxu1 %v4632_v62 }
  0xc4   : > { %4006 = vmatmul.mubr.f32.gmra.mrb[6].mxu1 %v5595_v20  ;;  %v3121_v20 = vld [vmem:[%s6425_s1 + $0x1e0] sm:$0xff] }
  0xc5   : > { %4350 = vmatmul.mubr.f32.gmra.mrb[22].mxu0 %v5972_v51  ;;  %4008 = vmatprep.mubr.f32.mxu1 %v5601_v22  ;;  %v6072_v22 = vld [vmem:[%s5323_s24 + $0x180] sm:$0xff] }
  0xc6   : > { %4352 = vmatprep.mubr.f32.mxu0 %v5976_v32  ;;  %4635 = vmatpush3.bf16.msra.mxu1 %v4632_v62 }
  0xc7   : > { %4637 = vmatprep.subr.bf16.mxu1 %v4636_v5 }
  0xc8   : > { %4009 = vmatmul.mubr.f32.gmra.mrb[8].mxu1 %v5617_v28  ;;  %v4644_v28 = vpack.c.bf16 %v3122_v45, %v3121_v20  ;;  %v3360_v45 = vld [vmem:[%s6425_s1 + $0x458] sm:$0xff] }
  0xc9   : > { %4353 = vmatmul.mubr.f32.gmra.mrb[24].mxu0 %v5988_v56  ;;  %4011 = vmatprep.mubr.f32.mxu1 %v5623_v30  ;;  %v6085_v30 = vld [vmem:[%s5323_s24 + $0x188] sm:$0xff] }
  0xca   : > { %4355 = vmatprep.mubr.f32.mxu0 %v5992_v1  ;;  %4639 = vmatpush3.bf16.msra.mxu1 %v4636_v5  ;;  %v3355_v5 = vld [vmem:[%s6425_s1 + $0x430] sm:$0xff] }
  0xcb   : > { %4641 = vmatprep.subr.bf16.mxu1 %v4640_v14  ;;  %v4792_v2 = vpack.c.bf16 %v3356_v11, %v3355_v5  ;;  %v6209_v5 = vld [vmem:[%s5323_s24 + $0x189] sm:$0xff]  ;;  %v3299_v11 = vld [vmem:[%s5323_s24 + $0x199] sm:$0xff] }
  0xcc   : > { %4012 = vmatmul.mubr.f32.gmra.mrb[10].mxu1 %v5639_v38  ;;  %v4648_v38 = vpack.c.bf16 %v3124_v63, %v3123_v50  ;;  %v3362_v63 = vld [vmem:[%s6425_s1 + $0x468] sm:$0xff] }
  0xcd   : > { %4356 = vmatmul.mubr.f32.gmra.mrb[26].mxu0 %v6004_v47  ;;  %4014 = vmatprep.mubr.f32.mxu1 %v5645_v40  ;;  %v3269_v40 = vld [vmem:[%s5323_s24 + $0x31] sm:$0xff] }
  0xce   : > { %4358 = vmatprep.mubr.f32.mxu0 %v6072_v22  ;;  %4643 = vmatpush3.bf16.msra.mxu1 %v4640_v14  ;;  %v3358_v14 = vld [vmem:[%s6425_s1 + $0x448] sm:$0xff] }
  0xcf   : > { %4645 = vmatprep.subr.bf16.mxu1 %v4644_v28 }
  0xd0   : > { %4015 = vmatmul.mubr.f32.gmra.mrb[12].mxu1 %v5661_v46  ;;  %v3352_v46 = vld [vmem:[%s6425_s1 + $0x418] sm:$0xff] }
  0xd1   : > { %4359 = vmatmul.mubr.f32.gmra.mrb[28].mxu0 %v6085_v30  ;;  %4017 = vmatprep.mubr.f32.mxu1 %v5667_v48  ;;  %v3270_v48 = vld [vmem:[%s5323_s24 + $0x39] sm:$0xff]  ;;  %v4784_v62 = vpack.c.bf16 %v3352_v46, %v3351_v42 }
  0xd2   : > { %4361 = vmatprep.mubr.f32.mxu0 %v3251_v27  ;;  %4647 = vmatpush3.bf16.msra.mxu1 %v4644_v28  ;;  %v3279_v28 = vld [vmem:[%s5323_s24 + $0xa9] sm:$0xff]  ;;  %v3364_v27 = vld [vmem:[%s6425_s1 + $0x478] sm:$0xff]  ;;  %v6517_v46 = vld [vmem:[#allocation29_spill] sm:$0xff] }
  0xd3   : > { %4649 = vmatprep.subr.bf16.mxu1 %v4648_v38  ;;  %v6516_v42 = vld [vmem:[#allocation8_spill] sm:$0xff] }
  0xd4   : > { %4018 = vmatmul.mubr.f32.gmra.mrb[14].mxu1 %v5683_v55  ;;  %v3353_v55 = vld [vmem:[%s6425_s1 + $0x420] sm:$0xff] }
  0xd5   : > { %4362 = vmatmul.mubr.f32.gmra.mrb[30].mxu0 %v3252_v23  ;;  %4020 = vmatprep.mubr.f32.mxu1 %v5689_v57  ;;  %v3272_v57 = vld [vmem:[%s5323_s24 + $0x51] sm:$0xff] }
  0xd6   : > { %4396 = vmatprep.mubr.f32.mxu0 %v3269_v40  ;;  %4651 = vmatpush3.bf16.msra.mxu1 %v4648_v38  ;;  %v6513_v38 = vld [vmem:[#allocation17_spill] sm:$0xff]  ;;  %v6514_v23 = vld [vmem:[#allocation28_spill] sm:$0xff]  ;;  %v6515_v40 = vld [vmem:[#allocation18_spill] sm:$0xff] }
  0xd7   : > { %4812 = vmatprep.subr.bf16.mxu1 %v5280_v7 }
  0xd8   : > { %4021 = vmatmul.mubr.f32.gmra.mrb[16].mxu1 %v5705_v0  ;;  %v4788_v0 = vpack.c.bf16 %v3354_v3, %v3353_v55  ;;  %v6201_v55 = vld [vmem:[%s5323_s24 + $0x181] sm:$0xff] }
  0xd9   : > { %4397 = vmatmul.mubr.f32.vlgmr.msra.gmra.mrb[0].mxu0 %v3270_v48  ;;  %4023 = vmatprep.mubr.f32.mxu1 %v5709_v6  ;;  %v3274_v6 = vld [vmem:[%s5323_s24 + $0x69] sm:$0xff]  ;;  %v6521_v3 = vld [vmem:[#allocation9_spill] sm:$0xff] }
  0xda   : > { %4783 = vmatpush3.bf16.msra.mxu0 %v6008_v16  ;;  %4399 = vmatprep.mubr.f32.mxu0 %v3271_v52  ;;  %v3275_v16 = vld [vmem:[%s5323_s24 + $0x79] sm:$0xff]  ;;  %v6518_v48 = vld [vmem:[#allocation19_spill] sm:$0xff]  ;;  %v6519_v52 = vld [vmem:[#allocation30_spill] sm:$0xff] }
  0xdb   : > { %4785 = vmatprep.subr.bf16.mxu0 %v4784_v62 }
  0xdc   : > { %4024 = vmatmul.mubr.f32.gmra.mrb[18].mxu1 %v5724_v18  ;;  %v3357_v18 = vld [vmem:[%s6425_s1 + $0x440] sm:$0xff] }
  0xdd   : > { %4400 = vmatmul.mubr.f32.gmra.mrb[2].mxu0 %v3272_v57  ;;  %4026 = vmatprep.mubr.f32.mxu1 %v5730_v25  ;;  %v3276_v25 = vld [vmem:[%s5323_s24 + $0x81] sm:$0xff]  ;;  %v4796_v20 = vpack.c.bf16 %v3358_v14, %v3357_v18  ;;  %v6522_v57 = vld [vmem:[#allocation31_spill] sm:$0xff] }
  0xde   : > { %4402 = vmatprep.mubr.f32.mxu0 %v3273_v29  ;;  %4787 = vmatpush3.bf16.msra.mxu0 %v4784_v62  ;;  %v6520_v62 = vld [vmem:[#allocation20_spill] sm:$0xff]  ;;  %v6523_v29 = vld [vmem:[#allocation21_spill] sm:$0xff] }
  0xdf   : > { %4789 = vmatprep.subr.bf16.mxu0 %v4788_v0  ;;  %v3300_v18 = vld [vmem:[%s5323_s24 + $0x1a1] sm:$0xff]  ;;  %v3317_v14 = vld [vmem:[%s5323_s24 + $0x32] sm:$0xff] }
  0xe0   : > { %4027 = vmatmul.mubr.f32.gmra.mrb[20].mxu1 %v5747_v41  ;;  %v3359_v41 = vld [vmem:[%s6425_s1 + $0x450] sm:$0xff] }
  0xe1   : > { %4403 = vmatmul.mubr.f32.gmra.mrb[4].mxu0 %v3274_v6  ;;  %4029 = vmatprep.mubr.f32.mxu1 %v5753_v44  ;;  %v3278_v44 = vld [vmem:[%s5323_s24 + $0x99] sm:$0xff]  ;;  %v4800_v50 = vpack.c.bf16 %v3360_v45, %v3359_v41  ;;  %v6525_v6 = vld [vmem:[#allocation10_spill] sm:$0xff] }
  0xe2   : > { %4405 = vmatprep.mubr.f32.mxu0 %v3275_v16  ;;  %4791 = vmatpush3.bf16.msra.mxu0 %v4788_v0  ;;  %v6524_v0 = vld [vmem:[#allocation32_spill] sm:$0xff]  ;;  %v6526_v16 = vld [vmem:[#allocation33_spill] sm:$0xff]  ;;  %v3319_v45 = vld [vmem:[%s5323_s24 + $0x4a] sm:$0xff] }
  0xe3   : > { %4793 = vmatprep.subr.bf16.mxu0 %v4792_v2  ;;  %v3318_v41 = vld [vmem:[%s5323_s24 + $0x3a] sm:$0xff] }
  0xe4   : > { %4030 = vmatmul.mubr.f32.gmra.mrb[22].mxu1 %v5769_v58  ;;  %v3361_v58 = vld [vmem:[%s6425_s1 + $0x460] sm:$0xff] }
  0xe5   : > { %4406 = vmatmul.mubr.f32.gmra.mrb[6].mxu0 %v3276_v25  ;;  %4032 = vmatprep.mubr.f32.mxu1 %v5775_v60  ;;  %v4804_v60 = vpack.c.bf16 %v3362_v63, %v3361_v58  ;;  %v6528_v25 = vld [vmem:[#allocation11_spill] sm:$0xff]  ;;  %v3334_v58 = vld [vmem:[%s5323_s24 + $0xfa] sm:$0xff] }
  0xe6   : > { %4408 = vmatprep.mubr.f32.mxu0 %v5485_v35  ;;  %4795 = vmatpush3.bf16.msra.mxu0 %v4792_v2  ;;  %v3280_v35 = vld [vmem:[%s5323_s24 + $0xb1] sm:$0xff]  ;;  %v6527_v2 = vld [vmem:[#allocation34_spill] sm:$0xff]  ;;  %v3144_v63 = vld [vmem:[%s5323_s24 + $0xf9] sm:$0xff] }
  0xe7   : > { %4797 = vmatprep.subr.bf16.mxu0 %v4796_v20 }
  0xe8   : > { %4033 = vmatmul.mubr.f32.gmra.mrb[24].mxu1 %v5791_v26  ;;  %v3363_v26 = vld [vmem:[%s6425_s1 + $0x470] sm:$0xff] }
  0xe9   : > { %4409 = vmatmul.mubr.f32.gmra.mrb[8].mxu0 %v3278_v44  ;;  %4035 = vmatprep.mubr.f32.mxu1 %v5797_v33  ;;  %v4808_v33 = vpack.c.bf16 %v3364_v27, %v3363_v26  ;;  %v3320_v44 = vld [vmem:[%s5323_s24 + $0x52] sm:$0xff]  ;;  %v3338_v27 = vld [vmem:[%s5323_s24 + $0x12a] sm:$0xff] }
  0xea   : > { %4411 = vmatprep.mubr.f32.mxu0 %v3279_v28  ;;  %4799 = vmatpush3.bf16.msra.mxu0 %v4796_v20  ;;  %v6529_v20 = vld [vmem:[#allocation35_spill] sm:$0xff]  ;;  %v3321_v28 = vld [vmem:[%s5323_s24 + $0x62] sm:$0xff] }
  0xeb   : > { %4801 = vmatprep.subr.bf16.mxu0 %v4800_v50  ;;  %v3146_v26 = vld [vmem:[%s5323_s24 + $0x111] sm:$0xff] }
  0xec   : > { %4036 = vmatmul.mubr.f32.gmra.mrb[26].mxu1 %v5813_v9  ;;  %v6510_v9 = vld [vmem:[#allocation16_spill] sm:$0xff] }
  0xed   : > { %4412 = vmatmul.mubr.f32.gmra.mrb[10].mxu0 %v3280_v35  ;;  %4038 = vmatprep.mubr.f32.mxu1 %v5819_v43  ;;  %v6499_v43 = vld [vmem:[#allocation22_spill] sm:$0xff]  ;;  %v3336_v35 = vld [vmem:[%s5323_s24 + $0x112] sm:$0xff] }
  0xee   : > { %4414 = vmatprep.mubr.f32.mxu0 %v5517_v54  ;;  %4803 = vmatpush3.bf16.msra.mxu0 %v4800_v50  ;;  %v6500_v54 = vld [vmem:[#allocation12_spill] sm:$0xff] }
  0xef   : > { %4805 = vmatprep.subr.bf16.mxu0 %v4804_v60  ;;  %v3323_v50 = vld [vmem:[%s5323_s24 + $0x7a] sm:$0xff] }
  0xf0   : > { %4039 = vmatmul.mubr.f32.gmra.mrb[28].mxu1 %v5835_v49  ;;  %v6511_v49 = vld [vmem:[#allocation7_spill] sm:$0xff] }
  0xf1   : > { %4415 = vmatmul.mubr.f32.gmra.mrb[12].mxu0 %v5533_v61  ;;  %4041 = vmatprep.mubr.f32.mxu1 %v5841_v53  ;;  %v6501_v61 = vld [vmem:[#allocation5_spill] sm:$0xff]  ;;  %v6504_v53 = vld [vmem:[#allocation24_spill] sm:$0xff] }
  0xf2   : > { %4417 = vmatprep.mubr.f32.mxu0 %v5553_v4  ;;  %4807 = vmatpush3.bf16.msra.mxu0 %v4804_v60  ;;  %v6502_v4 = vld [vmem:[#allocation23_spill] sm:$0xff]  ;;  %v3337_v60 = vld [vmem:[%s5323_s24 + $0x122] sm:$0xff] }
  0xf3   : > { %4809 = vmatprep.subr.bf16.mxu0 %v4808_v33 }
  0xf4   : > { %4042 = vmatmul.mubr.f32.gmra.mrb[30].mxu1 %v5857_v37  ;;  %v6512_v37 = vld [vmem:[#allocation27_spill] sm:$0xff] }
  0xf5   : > { %4418 = vmatmul.mubr.f32.gmra.mrb[14].mxu0 %v5569_v10  ;;  %4076 = vmatprep.mubr.f32.mxu1 %v5727_v24  ;;  %v6503_v10 = vld [vmem:[#allocation13_spill] sm:$0xff]  ;;  %v6506_v24 = vld [vmem:[#allocation6_spill] sm:$0xff] }
  0xf6   : > { %4420 = vmatprep.mubr.f32.mxu0 %v5576_v13  ;;  %4811 = vmatpush3.bf16.msra.mxu0 %v4808_v33  ;;  %v6505_v13 = vld [vmem:[#allocation14_spill] sm:$0xff] }
  0xf7   : > { %v3147_v33 = vld [vmem:[%s5323_s24 + $0x121] sm:$0xff] }
  0xf8   : > { %4077 = vmatmul.mubr.f32.vlgmr.msra.gmra.mrb[0].mxu1 %v5742_v34  ;;  %v6509_v34 = vld [vmem:[#allocation26_spill] sm:$0xff] }
  0xf9   : > { %4421 = vmatmul.mubr.f32.gmra.mrb[16].mxu0 %v5591_v19  ;;  %4820 = vmatpush3.bf16.msra.mxu1 %v5280_v7  ;;  %v6507_v19 = vld [vmem:[#allocation25_spill] sm:$0xff]  ;;  %v6508_v7 = vld [vmem:[#allocation15_spill] sm:$0xff] }
  0xfa   : > { %4079 = vmatprep.mubr.f32.mxu1 %v6499_v43  ;;  %4423 = vmatprep.mubr.f32.mxu0 %v6500_v54  ;;  %v3339_v43 = vld [vmem:[%s5323_s24 + $0x13a] sm:$0xff]  ;;  %v3148_v54 = vld [vmem:[%s5323_s24 + $0x129] sm:$0xff] }
  0xfb   : > { %4813 = vmatprep.subr.bf16.mxu1 %v6501_v61 }
  0xfc   : > { %4080 = vmatmul.mubr.f32.gmra.mrb[2].mxu1 %v6502_v4  ;;  %v3149_v4 = vld [vmem:[%s5323_s24 + $0x139] sm:$0xff] }
  0xfd   : > { %4424 = vmatmul.mubr.f32.gmra.mrb[18].mxu0 %v6503_v10  ;;  %4082 = vmatprep.mubr.f32.mxu1 %v6504_v53  ;;  %v3341_v10 = vld [vmem:[%s5323_s24 + $0x152] sm:$0xff]  ;;  %v3150_v53 = vld [vmem:[%s5323_s24 + $0x141] sm:$0xff] }
  0xfe   : > { %4426 = vmatprep.mubr.f32.mxu0 %v6505_v13  ;;  %4821 = vmatpush3.bf16.msra.mxu1 %v6501_v61  ;;  %v3340_v61 = vld [vmem:[%s5323_s24 + $0x142] sm:$0xff]  ;;  %v3342_v13 = vld [vmem:[%s5323_s24 + $0x15a] sm:$0xff] }
  0xff   : > { %4814 = vmatprep.subr.bf16.mxu1 %v6506_v24 }
 0x100   : > { %4083 = vmatmul.mubr.f32.gmra.mrb[4].mxu1 %v6507_v19  ;;  %v3343_v19 = vld [vmem:[%s5323_s24 + $0x16a] sm:$0xff] }
 0x101   : > { %4427 = vmatmul.mubr.f32.gmra.mrb[20].mxu0 %v6508_v7  ;;  %4085 = vmatprep.mubr.f32.mxu1 %v6509_v34  ;;  %v3152_v7 = vld [vmem:[%s5323_s24 + $0x159] sm:$0xff] }
 0x102   : > { %4429 = vmatprep.mubr.f32.mxu0 %v6510_v9  ;;  %4822 = vmatpush3.bf16.msra.mxu1 %v6506_v24  ;;  %v3151_v24 = vld [vmem:[%s5323_s24 + $0x151] sm:$0xff]  ;;  %v3153_v9 = vld [vmem:[%s5323_s24 + $0x169] sm:$0xff] }
 0x103   : > { %4815 = vmatprep.subr.bf16.mxu1 %v6511_v49  ;;  %v3344_v34 = vld [vmem:[%s5323_s24 + $0x172] sm:$0xff] }
 0x104   : > { %4086 = vmatmul.mubr.f32.gmra.mrb[6].mxu1 %v6512_v37  ;;  %v3154_v37 = vld [vmem:[%s5323_s24 + $0x171] sm:$0xff] }
 0x105   : > { %4430 = vmatmul.mubr.f32.gmra.mrb[22].mxu0 %v6513_v38  ;;  %4088 = vmatprep.mubr.f32.mxu1 %v6514_v23  ;;  %v3346_v38 = vld [vmem:[%s5323_s24 + $0x18a] sm:$0xff]  ;;  %v3347_v23 = vld [vmem:[%s5323_s24 + $0x19a] sm:$0xff] }
 0x106   : > { %4432 = vmatprep.mubr.f32.mxu0 %v6515_v40  ;;  %4823 = vmatpush3.bf16.msra.mxu1 %v6511_v49  ;;  %v3345_v49 = vld [vmem:[%s5323_s24 + $0x182] sm:$0xff] }
 0x107   : > { %4816 = vmatprep.subr.bf16.mxu1 %v6516_v42  ;;  %v3348_v40 = vld [vmem:[%s5323_s24 + $0x1a2] sm:$0xff] }
 0x108   : > { %4089 = vmatmul.mubr.f32.gmra.mrb[8].mxu1 %v6517_v46 }
 0x109   : > { %4433 = vmatmul.mubr.f32.gmra.mrb[24].mxu0 %v6518_v48  ;;  %4091 = vmatprep.mubr.f32.mxu1 %v6519_v52 }
 0x10a   : > { %4435 = vmatprep.mubr.f32.mxu0 %v6520_v62  ;;  %4824 = vmatpush3.bf16.msra.mxu1 %v6516_v42 }
 0x10b   : > { %4817 = vmatprep.subr.bf16.mxu1 %v6521_v3 }
 0x10c   : > { %4092 = vmatmul.mubr.f32.gmra.mrb[10].mxu1 %v6522_v57 }
 0x10d   : > { %4436 = vmatmul.mubr.f32.gmra.mrb[26].mxu0 %v6523_v29  ;;  %4094 = vmatprep.mubr.f32.mxu1 %v6524_v0 }
 0x10e   : > { %4438 = vmatprep.mubr.f32.mxu0 %v6201_v55  ;;  %4825 = vmatpush3.bf16.msra.mxu1 %v6521_v3 }
 0x10f   : > { %4818 = vmatprep.subr.bf16.mxu1 %v6525_v6 }
 0x110   : > { %4095 = vmatmul.mubr.f32.gmra.mrb[12].mxu1 %v6526_v16 }
 0x111   : > { %4439 = vmatmul.mubr.f32.gmra.mrb[28].mxu0 %v6209_v5  ;;  %4097 = vmatprep.mubr.f32.mxu1 %v6527_v2 }
 0x112   : > { %4441 = vmatprep.mubr.f32.mxu0 %v3299_v11  ;;  %4826 = vmatpush3.bf16.msra.mxu1 %v6525_v6 }
 0x113   : > { %4819 = vmatprep.subr.bf16.mxu1 %v6528_v25 }
 0x114   : > { %4098 = vmatmul.mubr.f32.gmra.mrb[14].mxu1 %v6529_v20 }
 0x115   : > { %4442 = vmatmul.mubr.f32.gmra.mrb[30].mxu0 %v3300_v18  ;;  %4100 = vmatprep.mubr.f32.mxu1 %v5894_v17  ;;  %v3322_v17 = vld [vmem:[%s5323_s24 + $0x6a] sm:$0xff] }
 0x116   : > { %4476 = vmatprep.mubr.f32.mxu0 %v3317_v14  ;;  %4827 = vmatpush3.bf16.msra.mxu1 %v6528_v25  ;;  %v6298_v25 = vld [vmem:[%s6426_s2] ss:$0 sm:$0xff] }
 0x118   : > { %4101 = vmatmul.mubr.f32.gmra.mrb[16].mxu1 %v5907_v39  ;;  %v3324_v39 = vld [vmem:[%s5323_s24 + $0x82] sm:$0xff] }
 0x119   : > { %4477 = vmatmul.mubr.f32.vlgmr.msra.gmra.mrb[0].mxu0 %v3318_v41  ;;  %4103 = vmatprep.mubr.f32.mxu1 %v5912_v12  ;;  %v3325_v12 = vld [vmem:[%s5323_s24 + $0x92] sm:$0xff] }
 0x11a   : > { %4479 = vmatprep.mubr.f32.mxu0 %v3319_v45 }
 0x11c   : > { %4104 = vmatmul.mubr.f32.gmra.mrb[18].mxu1 %v5924_v8  ;;  %v3326_v8 = vld [vmem:[%s5323_s24 + $0x9a] sm:$0xff] }
 0x11d   : > { %4480 = vmatmul.mubr.f32.gmra.mrb[2].mxu0 %v3320_v44  ;;  %4106 = vmatprep.mubr.f32.mxu1 %v5928_v36  ;;  %v3327_v36 = vld [vmem:[%s5323_s24 + $0xaa] sm:$0xff] }
 0x11e   : > { %4482 = vmatprep.mubr.f32.mxu0 %v3321_v28 }
 0x120   : > { %4107 = vmatmul.mubr.f32.gmra.mrb[20].mxu1 %v5940_v31  ;;  %v3328_v31 = vld [vmem:[%s5323_s24 + $0xb2] sm:$0xff] }
 0x121   : > { %4483 = vmatmul.mubr.f32.gmra.mrb[4].mxu0 %v3322_v17  ;;  %4109 = vmatprep.mubr.f32.mxu1 %v5944_v21  ;;  %v3329_v21 = vld [vmem:[%s5323_s24 + $0xc2] sm:$0xff] }
 0x122   : > { %4485 = vmatprep.mubr.f32.mxu0 %v3323_v50 }
 0x124   : > { %4110 = vmatmul.mubr.f32.gmra.mrb[22].mxu1 %v5956_v15  ;;  %v3330_v15 = vld [vmem:[%s5323_s24 + $0xca] sm:$0xff] }
 0x125   : > { %4486 = vmatmul.mubr.f32.gmra.mrb[6].mxu0 %v3324_v39  ;;  %4112 = vmatprep.mubr.f32.mxu1 %v5960_v59  ;;  %v3332_v59 = vld [vmem:[%s5323_s24 + $0xe2] sm:$0xff] }
 0x126   : > { %4488 = vmatprep.mubr.f32.mxu0 %v3325_v12 }
 0x128   : > { %4113 = vmatmul.mubr.f32.gmra.mrb[24].mxu1 %v5972_v51  ;;  %v3331_v51 = vld [vmem:[%s5323_s24 + $0xda] sm:$0xff] }
 0x129   : > { %4489 = vmatmul.mubr.f32.gmra.mrb[8].mxu0 %v3326_v8  ;;  %4115 = vmatprep.mubr.f32.mxu1 %v5976_v32  ;;  %v3333_v32 = vld [vmem:[%s5323_s24 + $0xf2] sm:$0xff] }
 0x12a   : > { %4491 = vmatprep.mubr.f32.mxu0 %v3327_v36 }
 0x12c   : > { %4116 = vmatmul.mubr.f32.gmra.mrb[26].mxu1 %v5988_v56  ;;  %v3141_v56 = vld [vmem:[%s5323_s24 + $0xd9] sm:$0xff] }
 0x12d   : > { %4492 = vmatmul.mubr.f32.gmra.mrb[10].mxu0 %v3328_v31  ;;  %4118 = vmatprep.mubr.f32.mxu1 %v5992_v1  ;;  %v3142_v1 = vld [vmem:[%s5323_s24 + $0xe1] sm:$0xff] }
 0x12e   : > { %4494 = vmatprep.mubr.f32.mxu0 %v3329_v21 }
 0x130   : > { %4119 = vmatmul.mubr.f32.gmra.mrb[28].mxu1 %v6004_v47  ;;  %v3143_v47 = vld [vmem:[%s5323_s24 + $0xf1] sm:$0xff] }
 0x131   : > { %4495 = vmatmul.mubr.f32.gmra.mrb[12].mxu0 %v3330_v15  ;;  %4121 = vmatprep.mubr.f32.mxu1 %v6072_v22  ;;  %v3335_v22 = vld [vmem:[%s5323_s24 + $0x10a] sm:$0xff] }
 0x132   : > { %4497 = vmatprep.mubr.f32.mxu0 %v3331_v51 }
 0x134   : > { %4122 = vmatmul.mubr.f32.gmra.mrb[30].mxu1 %v6085_v30  ;;  %v3145_v30 = vld [vmem:[%s5323_s24 + $0x109] sm:$0xff]  ;;  %s161_s24 = sand.u32 1, %s5180_s13  }
 0x135   : > { %4498 = vmatmul.mubr.f32.gmra.mrb[14].mxu0 %v3332_v59  ;;  %4180 = vmatprep.mubr.f32.mxu1 %v3141_v56  ;;  %s3043_s28 = sshll.u32 %s161_s24, 8  ;;  %s6383_s16 = scalar_lea.sflag [#allocation3], %s161_s24 }
 0x136   : > { %4500 = vmatprep.mubr.f32.mxu0 %v3333_v32  ;;  %s6304_s29 = scalar_lea.vmem [#allocation2], %s3043_s28 }
 0x137   : > { %s2977_s4 = sshll.u32 %s6304_s29, 4  ;;  %s6377_s4 = int_to_ptr.vmem [resolvable:$true] %s2977_s4 }
 0x138   : > { %4181 = vmatmul.mubr.f32.vlgmr.msra.gmra.mrb[16].mxu1 %v3142_v1  ;;  %s5126_s8 = scalar_lea.vmem %s6377_s4, 4096  ;;  %p5133_p0 = scmp.lt.s32.totalorder %s6377_s4, %s5131_s10 }
 0x139   : > { %4501 = vmatmul.mubr.f32.gmra.mrb[16].mxu0 %v3334_v58  ;;  %4183 = vmatprep.mubr.f32.mxu1 %v3143_v47  ;;  %p5127_p11 = scmp.ne.s32.totalorder %s6377_s4, %s5126_s8  ;;  %p5134_p1 = scmp.lt.s32.totalorder %s5132_s11, %s5126_s8 }
 0x13a   : > { %4503 = vmatprep.mubr.f32.mxu0 %v3335_v22 }
 0x13b   : > { %p5128_p12 = pnand %p5127_p11, %p5251_p5  ;;  %p5135_p2 = por %p5134_p1, %p5133_p0 }
 0x13c   : > { %4184 = vmatmul.mubr.f32.gmra.mrb[18].mxu1 %v3144_v63 }
 0x13d   : > { %4504 = vmatmul.mubr.f32.gmra.mrb[18].mxu0 %v3336_v35  ;;  %4186 = vmatprep.mubr.f32.mxu1 %v3145_v30  ;;  %p5129_p13 = pneg %p5128_p12 }
 0x13e   : > { %4506 = vmatprep.mubr.f32.mxu0 %v3337_v60 }
 0x13f   : > { %p5136_p3 = pnand %p5135_p2, %p5129_p13 }
 0x140   : > { %4187 = vmatmul.mubr.f32.gmra.mrb[20].mxu1 %v3146_v26 }
 0x141   : > { %4507 = vmatmul.mubr.f32.gmra.mrb[20].mxu0 %v3338_v27  ;;  %4189 = vmatprep.mubr.f32.mxu1 %v3147_v33 }
 0x142   : > { %4509 = vmatprep.mubr.f32.mxu0 %v3339_v43 }
 0x144   : > { %4190 = vmatmul.mubr.f32.gmra.mrb[22].mxu1 %v3148_v54 }
 0x145   : > { %4510 = vmatmul.mubr.f32.gmra.mrb[22].mxu0 %v3340_v61  ;;  %4192 = vmatprep.mubr.f32.mxu1 %v3149_v4 }
 0x146   : > { %4512 = vmatprep.mubr.f32.mxu0 %v3341_v10 }
 0x148   : > { %4193 = vmatmul.mubr.f32.gmra.mrb[24].mxu1 %v3150_v53 }
 0x149   : > { %4513 = vmatmul.mubr.f32.gmra.mrb[24].mxu0 %v3342_v13  ;;  %4195 = vmatprep.mubr.f32.mxu1 %v3151_v24 }
 0x14a   : > { %4515 = vmatprep.mubr.f32.mxu0 %v3343_v19 }
 0x14c   : > { %4196 = vmatmul.mubr.f32.gmra.mrb[26].mxu1 %v3152_v7 }
 0x14d   : > { %4516 = vmatmul.mubr.f32.gmra.mrb[26].mxu0 %v3344_v34  ;;  %4198 = vmatprep.mubr.f32.mxu1 %v3153_v9 }
 0x14e   : > { %4518 = vmatprep.mubr.f32.mxu0 %v3345_v49 }
 0x150   : > { %4199 = vmatmul.mubr.f32.gmra.mrb[28].mxu1 %v3154_v37 }
 0x151   : > { %4519 = vmatmul.mubr.f32.gmra.mrb[28].mxu0 %v3346_v38  ;;  %4201 = vmatprep.mubr.f32.mxu1 %v6201_v55 }
 0x152   : > { %4521 = vmatprep.mubr.f32.mxu0 %v3347_v23 }
 0x154   : > { %4202 = vmatmul.mubr.f32.gmra.mrb[30].mxu1 %v6209_v5 }
 0x155   : > { %4522 = vmatmul.mubr.f32.gmra.mrb[30].mxu0 %v3348_v40 }
 0x1cb   : > { %v4078_v42 = vpop.f32.mrb[0].mxu1 }
 0x1cc   : > { %v1138_v46 = vpop.f32.mrb[1].mxu1 }
 0x1cf   : > { %v4081_v48 = vpop.f32.mrb[2].mxu1 }
 0x1d0   : > { %v1148_v52 = vpop.f32.mrb[3].mxu1 }
 0x1d3   : > { %v4084_v62 = vpop.f32.mrb[4].mxu1 }
 0x1d4   : > { %v1158_v3 = vpop.f32.mrb[5].mxu1 }
 0x1d7   : > { %v4087_v57 = vpop.f32.mrb[6].mxu1 }
 0x1d8   : > { %v1168_v29 = vpop.f32.mrb[7].mxu1 }
 0x1db   : > { %v4090_v0 = vpop.f32.mrb[8].mxu1 }
 0x1dc   : > { %v1178_v11 = vpop.f32.mrb[9].mxu1 }
 0x1df   : > { %v4093_v6 = vpop.f32.mrb[10].mxu1 }
 0x1e0   : > { %v1188_v16 = vpop.f32.mrb[11].mxu1 }
 0x1e3   : > { %v6286_v55 = vpop.f32.mrb[12].mxu1 }
 0x1e4   : > { %v6288_v2 = vpop.f32.mrb[13].mxu1 }
 0x1e7   : > { %v6290_v5 = vpop.f32.mrb[14].mxu1 }
 0x1e8   : > { %v6292_v18 = vpop.f32.mrb[15].mxu1 }
 0x1ec   : > { %v4478_v14 = vpop.f32.mrb[0].mxu0 }
 0x1ed   : > { %v4828_v20 = vadd.f32 %v4478_v14, %v4078_v42  ;;  %v2669_v41 = vpop.f32.mrb[1].mxu0 }
 0x1ee   : > { %v4829_v45 = vadd.f32 %v2669_v41, %v1138_v46 }
 0x1ef   : > { %v2868_v44 = vadd.f32 %v4828_v20, %v6298_v25 }
 0x1f0   : > { %v2867_v28 = vadd.f32 %v4829_v45, %v6298_v25  ;;  %v4481_v17 = vpop.f32.mrb[2].mxu0 }
 0x1f1   : > { %v2900_v50 = vmax.f32 %v2868_v44, 0.0  ;;  %v4830_v39 = vadd.f32 %v4481_v17, %v4081_v48  ;;  %v2679_v12 = vpop.f32.mrb[3].mxu0 }
 0x1f2   : > { %v2899_v8 = vmax.f32 %v2867_v28, 0.0  ;;  %v4831_v36 = vadd.f32 %v2679_v12, %v1148_v52 }
 0x1f3   : > { %2932 = vst [vmem:[%s6304_s29 + $0x8] sm:$0xff] %v2900_v50  ;;  %v2870_v31 = vadd.f32 %v4830_v39, %v6298_v25 }
 0x1f4   : > { %2931 = vst [vmem:[%s6304_s29] sm:$0xff] %v2899_v8  ;;  %v2869_v21 = vadd.f32 %v4831_v36, %v6298_v25  ;;  %v4484_v15 = vpop.f32.mrb[4].mxu0 }
 0x1f5   : > { %v2902_v51 = vmax.f32 %v2870_v31, 0.0  ;;  %v4832_v59 = vadd.f32 %v4484_v15, %v4084_v62  ;;  %v2689_v56 = vpop.f32.mrb[5].mxu0 }
 0x1f6   : > { %v2901_v32 = vmax.f32 %v2869_v21, 0.0  ;;  %v4833_v1 = vadd.f32 %v2689_v56, %v1158_v3 }
 0x1f7   : > { %2934 = vst [vmem:[%s6304_s29 + $0x18] sm:$0xff] %v2902_v51  ;;  %v2872_v58 = vadd.f32 %v4832_v59, %v6298_v25 }
 0x1f8   : > { %2933 = vst [vmem:[%s6304_s29 + $0x10] sm:$0xff] %v2901_v32  ;;  %v2871_v47 = vadd.f32 %v4833_v1, %v6298_v25  ;;  %v4487_v22 = vpop.f32.mrb[6].mxu0 }
 0x1f9   : > { %v2904_v63 = vmax.f32 %v2872_v58, 0.0  ;;  %v4834_v35 = vadd.f32 %v4487_v22, %v4087_v57  ;;  %v2699_v30 = vpop.f32.mrb[7].mxu0 }
 0x1fa   : > { %v2903_v60 = vmax.f32 %v2871_v47, 0.0  ;;  %v4835_v26 = vadd.f32 %v2699_v30, %v1168_v29 }
 0x1fb   : > { %2936 = vst [vmem:[%s6304_s29 + $0x28] sm:$0xff] %v2904_v63  ;;  %v2874_v27 = vadd.f32 %v4834_v35, %v6298_v25 }
 0x1fc   : > { %2935 = vst [vmem:[%s6304_s29 + $0x20] sm:$0xff] %v2903_v60  ;;  %v2873_v33 = vadd.f32 %v4835_v26, %v6298_v25  ;;  %v4490_v43 = vpop.f32.mrb[8].mxu0 }
 0x1fd   : > { %v2906_v54 = vmax.f32 %v2874_v27, 0.0  ;;  %v4836_v61 = vadd.f32 %v4490_v43, %v4090_v0  ;;  %v2709_v4 = vpop.f32.mrb[9].mxu0 }
 0x1fe   : > { %v2905_v10 = vmax.f32 %v2873_v33, 0.0  ;;  %v4837_v53 = vadd.f32 %v2709_v4, %v1178_v11 }
 0x1ff   : > { %2938 = vst [vmem:[%s6304_s29 + $0x38] sm:$0xff] %v2906_v54  ;;  %v2876_v13 = vadd.f32 %v4836_v61, %v6298_v25 }
 0x200   : > { %2937 = vst [vmem:[%s6304_s29 + $0x30] sm:$0xff] %v2905_v10  ;;  %v2875_v24 = vadd.f32 %v4837_v53, %v6298_v25  ;;  %v4493_v19 = vpop.f32.mrb[10].mxu0 }
 0x201   : > { %v2908_v7 = vmax.f32 %v2876_v13, 0.0  ;;  %v4838_v34 = vadd.f32 %v4493_v19, %v4093_v6  ;;  %v2719_v9 = vpop.f32.mrb[11].mxu0 }
 0x202   : > { %v2907_v49 = vmax.f32 %v2875_v24, 0.0  ;;  %v4839_v37 = vadd.f32 %v2719_v9, %v1188_v16 }
 0x203   : > { %2940 = vst [vmem:[%s6304_s29 + $0x48] sm:$0xff] %v2908_v7  ;;  %v2878_v38 = vadd.f32 %v4838_v34, %v6298_v25 }
 0x204   : > { %2939 = vst [vmem:[%s6304_s29 + $0x40] sm:$0xff] %v2907_v49  ;;  %v2877_v23 = vadd.f32 %v4839_v37, %v6298_v25  ;;  %v4496_v40 = vpop.f32.mrb[12].mxu0 }
 0x205   : > { %v2910_v42 = vmax.f32 %v2878_v38, 0.0  ;;  %v4840_v46 = vadd.f32 %v4496_v40, %v6286_v55  ;;  %v2729_v48 = vpop.f32.mrb[13].mxu0 }
 0x206   : > { %v2909_v52 = vmax.f32 %v2877_v23, 0.0  ;;  %v4841_v62 = vadd.f32 %v2729_v48, %v6288_v2 }
 0x207   : > { %2942 = vst [vmem:[%s6304_s29 + $0x58] sm:$0xff] %v2910_v42  ;;  %v2880_v3 = vadd.f32 %v4840_v46, %v6298_v25 }
 0x208   : > { %2941 = vst [vmem:[%s6304_s29 + $0x50] sm:$0xff] %v2909_v52  ;;  %v2879_v57 = vadd.f32 %v4841_v62, %v6298_v25  ;;  %v4499_v29 = vpop.f32.mrb[14].mxu0 }
 0x209   : > { %v2912_v0 = vmax.f32 %v2880_v3, 0.0  ;;  %v4842_v11 = vadd.f32 %v4499_v29, %v6290_v5  ;;  %v2739_v6 = vpop.f32.mrb[15].mxu0 }
 0x20a   : > { %v2911_v16 = vmax.f32 %v2879_v57, 0.0  ;;  %v4843_v55 = vadd.f32 %v2739_v6, %v6292_v18 }
 0x20b   : > { %2944 = vst [vmem:[%s6304_s29 + $0x68] sm:$0xff] %v2912_v0  ;;  %v2882_v14 = vadd.f32 %v4842_v11, %v6298_v25  ;;  %v4182_v2 = vpop.f32.mrb[16].mxu1 }
 0x20c   : > { %2943 = vst [vmem:[%s6304_s29 + $0x60] sm:$0xff] %v2911_v16  ;;  %v2881_v20 = vadd.f32 %v4843_v55, %v6298_v25  ;;  %v4502_v41 = vpop.f32.mrb[16].mxu0  ;;  %v1524_v45 = vpop.f32.mrb[17].mxu1 }
 0x20d   : > { %v2914_v44 = vmax.f32 %v2882_v14, 0.0  ;;  %v4844_v28 = vadd.f32 %v4502_v41, %v4182_v2  ;;  %v2749_v17 = vpop.f32.mrb[17].mxu0 }
 0x20e   : > { %v2913_v5 = vmax.f32 %v2881_v20, 0.0  ;;  %v4845_v50 = vadd.f32 %v2749_v17, %v1524_v45 }
 0x20f   : > { %2946 = vst [vmem:[%s6304_s29 + $0x78] sm:$0xff] %v2914_v44  ;;  %v2884_v18 = vadd.f32 %v4844_v28, %v6298_v25  ;;  %v4185_v39 = vpop.f32.mrb[18].mxu1 }
 0x210   : > { %2945 = vst [vmem:[%s6304_s29 + $0x70] sm:$0xff] %v2913_v5  ;;  %v2883_v12 = vadd.f32 %v4845_v50, %v6298_v25  ;;  %v4505_v8 = vpop.f32.mrb[18].mxu0  ;;  %v1534_v36 = vpop.f32.mrb[19].mxu1 }
 0x211   : > { %v2916_v31 = vmax.f32 %v2884_v18, 0.0  ;;  %v4846_v21 = vadd.f32 %v4505_v8, %v4185_v39  ;;  %v2759_v15 = vpop.f32.mrb[19].mxu0 }
 0x212   : > { %v2915_v51 = vmax.f32 %v2883_v12, 0.0  ;;  %v4847_v59 = vadd.f32 %v2759_v15, %v1534_v36 }
 0x213   : > { %2948 = vst [vmem:[%s6304_s29 + $0x88] sm:$0xff] %v2916_v31  ;;  %v2886_v56 = vadd.f32 %v4846_v21, %v6298_v25  ;;  %v4188_v32 = vpop.f32.mrb[20].mxu1 }
 0x214   : > { %2947 = vst [vmem:[%s6304_s29 + $0x80] sm:$0xff] %v2915_v51  ;;  %v2885_v1 = vadd.f32 %v4847_v59, %v6298_v25  ;;  %v4508_v58 = vpop.f32.mrb[20].mxu0  ;;  %v1544_v47 = vpop.f32.mrb[21].mxu1 }
 0x215   : > { %v2918_v22 = vmax.f32 %v2886_v56, 0.0  ;;  %v4848_v63 = vadd.f32 %v4508_v58, %v4188_v32  ;;  %v2769_v35 = vpop.f32.mrb[21].mxu0 }
 0x216   : > { %v2917_v30 = vmax.f32 %v2885_v1, 0.0  ;;  %v4849_v60 = vadd.f32 %v2769_v35, %v1544_v47 }
 0x217   : > { %2950 = vst [vmem:[%s6304_s29 + $0x98] sm:$0xff] %v2918_v22  ;;  %v2888_v26 = vadd.f32 %v4848_v63, %v6298_v25  ;;  %v4191_v27 = vpop.f32.mrb[22].mxu1 }
 0x218   : > { %2949 = vst [vmem:[%s6304_s29 + $0x90] sm:$0xff] %v2917_v30  ;;  %v2887_v33 = vadd.f32 %v4849_v60, %v6298_v25  ;;  %v4511_v43 = vpop.f32.mrb[22].mxu0  ;;  %v1554_v54 = vpop.f32.mrb[23].mxu1 }
 0x219   : > { %v2920_v61 = vmax.f32 %v2888_v26, 0.0  ;;  %v4850_v4 = vadd.f32 %v4511_v43, %v4191_v27  ;;  %v2779_v10 = vpop.f32.mrb[23].mxu0 }
 0x21a   : > { %v2919_v53 = vmax.f32 %v2887_v33, 0.0  ;;  %v4851_v13 = vadd.f32 %v2779_v10, %v1554_v54 }
 0x21b   : > { %2952 = vst [vmem:[%s6304_s29 + $0xa8] sm:$0xff] %v2920_v61  ;;  %v2890_v24 = vadd.f32 %v4850_v4, %v6298_v25  ;;  %v4194_v19 = vpop.f32.mrb[24].mxu1 }
 0x21c   : > { %2951 = vst [vmem:[%s6304_s29 + $0xa0] sm:$0xff] %v2919_v53  ;;  %v2889_v7 = vadd.f32 %v4851_v13, %v6298_v25  ;;  %v4514_v34 = vpop.f32.mrb[24].mxu0  ;;  %v1564_v9 = vpop.f32.mrb[25].mxu1 }
 0x21d   : > { %v2922_v49 = vmax.f32 %v2890_v24, 0.0  ;;  %v4852_v37 = vadd.f32 %v4514_v34, %v4194_v19  ;;  %v2789_v38 = vpop.f32.mrb[25].mxu0 }
 0x21e   : > { %v2921_v23 = vmax.f32 %v2889_v7, 0.0  ;;  %v4853_v40 = vadd.f32 %v2789_v38, %v1564_v9 }
 0x21f   : > { %2954 = vst [vmem:[%s6304_s29 + $0xb8] sm:$0xff] %v2922_v49  ;;  %v2892_v42 = vadd.f32 %v4852_v37, %v6298_v25  ;;  %v4197_v46 = vpop.f32.mrb[26].mxu1 }
 0x220   : > { %2953 = vst [vmem:[%s6304_s29 + $0xb0] sm:$0xff] %v2921_v23  ;;  %v2891_v48 = vadd.f32 %v4853_v40, %v6298_v25  ;;  %v4517_v52 = vpop.f32.mrb[26].mxu0  ;;  %v1574_v62 = vpop.f32.mrb[27].mxu1 }
 0x221   : > { %v2924_v3 = vmax.f32 %v2892_v42, 0.0  ;;  %v4854_v57 = vadd.f32 %v4517_v52, %v4197_v46  ;;  %v2799_v29 = vpop.f32.mrb[27].mxu0 }
 0x222   : > { %v2923_v0 = vmax.f32 %v2891_v48, 0.0  ;;  %v4855_v11 = vadd.f32 %v2799_v29, %v1574_v62 }
 0x223   : > { %2956 = vst [vmem:[%s6304_s29 + $0xc8] sm:$0xff] %v2924_v3  ;;  %v2894_v6 = vadd.f32 %v4854_v57, %v6298_v25  ;;  %v4200_v16 = vpop.f32.mrb[28].mxu1 }
 0x224   : > { %2955 = vst [vmem:[%s6304_s29 + $0xc0] sm:$0xff] %v2923_v0  ;;  %v2893_v55 = vadd.f32 %v4855_v11, %v6298_v25  ;;  %v4520_v14 = vpop.f32.mrb[28].mxu0  ;;  %v1584_v2 = vpop.f32.mrb[29].mxu1 }
 0x225   : > { %v2926_v20 = vmax.f32 %v2894_v6, 0.0  ;;  %v4856_v41 = vadd.f32 %v4520_v14, %v4200_v16  ;;  %v2809_v45 = vpop.f32.mrb[29].mxu0 }
 0x226   : > { %v2925_v44 = vmax.f32 %v2893_v55, 0.0  ;;  %v4857_v28 = vadd.f32 %v2809_v45, %v1584_v2 }
 0x227   : > { %2958 = vst [vmem:[%s6304_s29 + $0xd8] sm:$0xff] %v2926_v20  ;;  %v2896_v17 = vadd.f32 %v4856_v41, %v6298_v25  ;;  %v4203_v5 = vpop.f32.mrb[30].mxu1 }
 0x228   : > { %2957 = vst [vmem:[%s6304_s29 + $0xd0] sm:$0xff] %v2925_v44  ;;  %v2895_v50 = vadd.f32 %v4857_v28, %v6298_v25  ;;  %v4523_v18 = vpop.f32.mrb[30].mxu0  ;;  %v1594_v39 = vpop.f32.mrb[31].mxu1 }
 0x229   : > { %v2928_v12 = vmax.f32 %v2896_v17, 0.0  ;;  %v4858_v8 = vadd.f32 %v4523_v18, %v4203_v5  ;;  %v2819_v36 = vpop.f32.mrb[31].mxu0 }
 0x22a   : > { %v2927_v31 = vmax.f32 %v2895_v50, 0.0  ;;  %v4859_v21 = vadd.f32 %v2819_v36, %v1594_v39 }
 0x22b   : > { %2960 = vst [vmem:[%s6304_s29 + $0xe8] sm:$0xff] %v2928_v12  ;;  %v2898_v15 = vadd.f32 %v4858_v8, %v6298_v25 }
 0x22c   : > { %2959 = vst [vmem:[%s6304_s29 + $0xe0] sm:$0xff] %v2927_v31  ;;  %v2897_v51 = vadd.f32 %v4859_v21, %v6298_v25 }
 0x22d   : > { %v2930_v59 = vmax.f32 %v2898_v15, 0.0 }
 0x22e   : > { %v2929_v56 = vmax.f32 %v2897_v51, 0.0 }
 0x22f   : > { %2962 = vst [vmem:[%s6304_s29 + $0xf8] sm:$0xff] %v2930_v59 }
 0x230   : > { %2961 = vst [vmem:[%s6304_s29 + $0xf0] sm:$0xff] %v2929_v56 }
 0x231   : > { %5139 = shalt.err (!%p5136_p3)
}
 0x232   : > { %s5140_s17 = scalar_lea.hbm %s6375_s7, 4096  ;;  %s5144_s25 = scalar_lea.hbm %s6427_s3, 8192 }
 0x233   : > { %p5141_p4 = scmp.ne.s32.totalorder %s6375_s7, %s5140_s17  ;;  %p5145_p9 = scmp.lt.u32.totalorder %s6375_s7, %s6427_s3 }
 0x234   : > { %p5146_p10 = scmp.lt.u32.totalorder %s5144_s25, %s5140_s17  ;;  %p5148_p12 = scmp.lt.u32.totalorder %s5140_s17, %s6375_s7 }
 0x235   : > { %p5142_p7 = pnand %p5141_p4, %p5251_p5 }
 0x236   : > { %p5147_p11 = por %p5146_p10, %p5145_p9 }
 0x237   : > { %p5143_p8 = pneg %p5142_p7 }
 0x238   : > { %p5149_p13 = por %p5148_p12, %p5147_p11 }
 0x23a   : > { %p5150_p0 = pnand %p5149_p13, %p5143_p8 }
 0x23c   : > { %5153 = shalt.err (!%p5150_p0)
}
 0x23d   : > { %s5191_s27 = smov 128   ;;  %s5192_s28 = smov 8  }
 0x23e   : > { %5085 = dma.vmem_to_hbm [thread:$0]  (%p5251_p5), %s6377_s4, 4096, %s6375_s7, %s6383_s16, %s5191_s27, %s5191_s27, %s5192_s28  }
 0x23f PF: > { %p5091_p1 = scmp.ge.s32.totalorder %s5188_s15, 2  ;;  %s2992_s29 = sand.u32 1, %s5176_s12  }
 0x240   : > { %s2993_s30 = scalar_lea.sflag [#allocation3], %s2992_s29 }
 0x241   : > { %p5088_p2 = pnand %p5091_p1, %p5255_p6 }
 0x243   : > { %5171 = dma.done.wait (!%p5088_p2), %s2993_s30, 4096  }
 0x244   : > { %5173 = vsyncadd (!%p5088_p2), %s2993_s30, 4294963200  ;;  %p13_p3 = scmp.ge.s32.totalorder %s5238_s18, 4   ;;  %s6530_s12 = smov %s5180_s13 }
 0x245   : > { %s6531_s13 = smov %s5184_s14  ;;  %s6532_s14 = smov %s5249_s21 }
 0x246   : > { %s6533_s15 = smov %s5238_s18  ;;  %15 = sbr.rel (!%p13_p3) target bundleno = 3 (0x3), region = 77 }
 0x24d   :  { %2998 = vsyncpa [#allocation3], 1 }
 0x24e   :  { %3000 = vsyncpa [#allocation3 + $0x1], 1 }

</bundles_post_ra>
